<compile_context>
chip_gen: v5e
topology: v5e:2x2
jax: 0.10.0
libtpu: 0.0.40
codegen_flags: <defaults>
</compile_context>

<pallas_src>
import math
import functools

import jax
import jax.numpy as jnp
import numpy as np
from jax import lax
from jax.experimental import pallas as pl
from jax.experimental.pallas import tpu as pltpu


_VMEM_LIMIT = 64 * 1024 * 1024


def _pick_tile(n, target, align):
    """Largest multiple of `align` dividing n and <= target (else n)."""
    if n <= target:
        return n
    t = (target // align) * align
    while t >= align:
        if n % t == 0:
            return t
        t -= align
    return n


# ---------------------------------------------------------------------------
# Tiled linear projection:  out = x @ w_t   (w_t is the pre-transposed weight)
# ---------------------------------------------------------------------------

def _matmul_kernel(x_ref, w_ref, o_ref, acc_ref):
    @pl.when(pl.program_id(2) == 0)
    def _init():
        acc_ref[...] = jnp.zeros(acc_ref.shape, acc_ref.dtype)

    acc_ref[...] += jnp.dot(x_ref[...], w_ref[...],
                            preferred_element_type=jnp.float32)

    @pl.when(pl.program_id(2) == pl.num_programs(2) - 1)
    def _done():
        o_ref[...] = acc_ref[...].astype(o_ref.dtype)


def linear(x2d, w_t, *, tm=512, tn=512, tk=512):
    """x2d: (M, K), w_t: (K, N) pre-transposed nn.Linear weight -> (M, N)."""
    M, K = x2d.shape
    K2, N = w_t.shape
    assert K == K2
    tm = _pick_tile(M, tm, 16 if M % 16 == 0 else 8)
    tn = _pick_tile(N, tn, 128)
    tk = _pick_tile(K, tk, 128)
    grid = (M // tm, N // tn, K // tk)
    cost = pl.CostEstimate(
        flops=2 * M * N * K, transcendentals=0,
        bytes_accessed=int((M * K + K * N + M * N) * x2d.dtype.itemsize))
    return pl.pallas_call(
        _matmul_kernel,
        out_shape=jax.ShapeDtypeStruct((M, N), x2d.dtype),
        grid=grid,
        in_specs=[
            pl.BlockSpec((tm, tk), lambda i, j, k: (i, k)),
            pl.BlockSpec((tk, tn), lambda i, j, k: (k, j)),
        ],
        out_specs=pl.BlockSpec((tm, tn), lambda i, j, k: (i, j)),
        scratch_shapes=[pltpu.VMEM((tm, tn), jnp.float32)],
        compiler_params=pltpu.CompilerParams(
            dimension_semantics=("parallel", "parallel", "arbitrary"),
            vmem_limit_bytes=_VMEM_LIMIT),
        cost_estimate=cost,
    )(x2d, w_t)


# ---------------------------------------------------------------------------
# One-shot RoPE pre-pass (rotates the Q and K halves of the fused QKV output).
# Per-head [reals | imags] layout -> the pair swap is two lane rolls + select.
# ---------------------------------------------------------------------------

def _rope_kernel(x_ref, cos_ref, sin_ref, o_ref, *, head_dim):
    x = x_ref[...].astype(jnp.float32)
    d = x.shape[-1]
    d2 = head_dim // 2
    fwd = pltpu.roll(x, shift=d2, axis=1)        # lane j <- lane j - d2
    bwd = pltpu.roll(x, shift=d - d2, axis=1)    # lane j <- lane j + d2
    col = lax.broadcasted_iota(jnp.int32, x.shape, 1)
    is_imag = (col % head_dim) >= d2
    swapped = jnp.where(is_imag, fwd, bwd)       # each slot's rotary partner
    o_ref[...] = (x * cos_ref[...] + swapped * sin_ref[...]).astype(o_ref.dtype)


def rope_prepass(qkv3, cos_full, sin_signed, *, head_dim, rows=256):
    B, S, three_dim = qkv3.shape
    dim = three_dim // 3
    rows = _pick_tile(S, rows, 8)
    kernel = functools.partial(_rope_kernel, head_dim=head_dim)
    return pl.pallas_call(
        kernel,
        out_shape=jax.ShapeDtypeStruct((B, S, 2 * dim), qkv3.dtype),
        grid=(B, S // rows, 2),
        in_specs=[
            pl.BlockSpec((None, rows, dim), lambda b, r, c: (b, r, c)),
            pl.BlockSpec((rows, dim), lambda b, r, c: (r, 0)),
            pl.BlockSpec((rows, dim), lambda b, r, c: (r, 0)),
        ],
        out_specs=pl.BlockSpec((None, rows, dim), lambda b, r, c: (b, r, c)),
        compiler_params=pltpu.CompilerParams(
            dimension_semantics=("parallel", "parallel", "parallel"),
            vmem_limit_bytes=_VMEM_LIMIT),
    )(qkv3, cos_full, sin_signed)


# ---------------------------------------------------------------------------
# Flash-style attention.  Grid: (batch, head_block, q_block, kv_block).
# ---------------------------------------------------------------------------

def _flash_attn_kernel(q_ref, k_ref, v_ref, o_ref, m_scr, l_scr, acc_scr, *,
                       heads_per_block, head_dim, causal, block_q, block_kv,
                       approx_recip):
    qi = pl.program_id(2)
    ki = pl.program_id(3)
    n_kv = pl.num_programs(3)

    @pl.when(ki == 0)
    def _init():
        m_scr[...] = jnp.full(m_scr.shape, -jnp.inf, m_scr.dtype)
        l_scr[...] = jnp.zeros(l_scr.shape, l_scr.dtype)
        acc_scr[...] = jnp.zeros(acc_scr.shape, acc_scr.dtype)

    def _compute():
        if causal:
            rows = qi * block_q + lax.broadcasted_iota(
                jnp.int32, (block_q, block_kv), 0)
            cols = ki * block_kv + lax.broadcasted_iota(
                jnp.int32, (block_q, block_kv), 1)
            keep = cols <= rows
        dn_qk = (((1,), (1,)), ((), ()))   # q @ k.T  (contract head_dim)
        dn_pv = (((1,), (0,)), ((), ()))   # p @ v
        for hh in range(heads_per_block):   # 1-2 heads per 128-lane block
            sl = slice(hh * head_dim, (hh + 1) * head_dim)
            qh = q_ref[:, sl]               # already rotated + scaled
            kh = k_ref[:, sl]               # already rotated
            s = lax.dot_general(qh, kh, dn_qk,
                                preferred_element_type=jnp.float32)
            if causal:
                s = jnp.where(keep, s, -jnp.inf)

            m_prev = m_scr[hh]              # (bq, 128), all lanes equal
            l_prev = l_scr[hh]
            # NOTE: KV block 0 always holds >=1 valid key per row -> no 0/0.
            m_new = jnp.maximum(m_prev, jnp.max(s, axis=-1, keepdims=True))
            m_col = m_new[:, :1]
            alpha = jnp.exp(m_prev[:, :1] - m_col)      # (bq, 1)
            p = jnp.exp(s - m_col)                      # (bq, bkv)
            l_scr[hh] = alpha * l_prev + jnp.sum(p, axis=-1, keepdims=True)
            m_scr[hh] = m_new
            pv = lax.dot_general(p.astype(v_ref.dtype), v_ref[:, sl], dn_pv,
                                 preferred_element_type=jnp.float32)
            acc_scr[hh] = alpha * acc_scr[hh] + pv

    if causal:
        # Skip compute for KV blocks entirely in the future of this q block.
        pl.when(ki * block_kv <= qi * block_q + block_q - 1)(_compute)
    else:
        _compute()

    @pl.when(ki == n_kv - 1)
    def _finalize():
        for hh in range(heads_per_block):
            inv = pl.reciprocal(l_scr[hh][:, :1], approx=approx_recip)
            o_ref[:, hh * head_dim:(hh + 1) * head_dim] = (
                acc_scr[hh] * inv).astype(o_ref.dtype)


# ---------------------------------------------------------------------------
# Wrapper: full Attention.forward
# ---------------------------------------------------------------------------

def attention_forward(x, wq, wk, wv, wo, angles, n_heads, *, causal=True,
                      block_q=128, block_kv=256):
    """x: (B, S, dim); wq/wk/wv/wo: (dim, dim) torch-layout Linear weights;
    angles: (S, head_dim//2) rotary angles (angle of freqs_cis)."""
    B, S, dim = x.shape
    head_dim = dim // n_heads
    assert n_heads * head_dim == dim
    assert head_dim % 2 == 0
    if head_dim >= 128:
        assert head_dim % 128 == 0, "head blocks need 128-lane alignment"
        heads_per_block = 1
    else:
        assert 128 % head_dim == 0, "head blocks need 128-lane alignment"
        heads_per_block = 128 // head_dim
    assert n_heads % heads_per_block == 0
    col_w = heads_per_block * head_dim          # lane width of one head block
    n_hblk = n_heads // heads_per_block

    block_q = _pick_tile(S, block_q, 16 if S % 16 == 0 else 8)
    block_kv = _pick_tile(S, block_kv, 128 if S % 128 == 0 else 8)
    nq, nkv = S // block_q, S // block_kv

    # ---- one-time weight / table prep (cache these in a real model) -------
    # Per-head de-interleave of the (real, imag) rotary pairs: head h's new
    # columns are [reals | imags].  Scores are invariant under this consistent
    # q/k feature permutation, so results match the interleaved reference.
    d2 = head_dim // 2
    perm = np.empty((dim,), dtype=np.int32)
    for h in range(n_heads):
        for i in range(d2):
            perm[h * head_dim + i] = h * head_dim + 2 * i
            perm[h * head_dim + d2 + i] = h * head_dim + 2 * i + 1
    scale = 1.0 / math.sqrt(head_dim)
    # 1/sqrt(head_dim) folded into Wq; fused, pre-transposed [Wq;Wk;Wv]^T.
    w_qkv_t = jnp.concatenate([wq[perm] * scale, wk[perm], wv], axis=0).T
    wo_t = wo.T

    cos_half = jnp.cos(angles).astype(jnp.float32)        # (S, head_dim//2)
    sin_half = jnp.sin(angles).astype(jnp.float32)
    cos_full = jnp.tile(jnp.concatenate([cos_half, cos_half], axis=-1),
                        (1, n_heads))                     # (S, dim)
    sin_signed = jnp.tile(jnp.concatenate([-sin_half, sin_half], axis=-1),
                          (1, n_heads))                   # (S, dim)

    # ---- 1. fused QKV projection ------------------------------------------
    qkv3 = linear(x.reshape(B * S, dim), w_qkv_t).reshape(B, S, 3 * dim)

    # ---- 2. one-shot RoPE on the Q and K halves ----------------------------
    qk_rot3 = rope_prepass(qkv3, cos_full, sin_signed, head_dim=head_dim)

    # ---- 3. flash attention over (batch, head block, q block, kv block) ----
    kernel = functools.partial(
        _flash_attn_kernel, heads_per_block=heads_per_block,
        head_dim=head_dim, causal=causal, block_q=block_q, block_kv=block_kv,
        approx_recip=(x.dtype == jnp.bfloat16))

    if causal:
        def kv_idx(q, kv):
            # Clamp so fully-masked future KV blocks repeat the previous block
            # index -> Pallas elides the DMA (compute stays pl.when-guarded).
            return jnp.minimum(kv, (q * block_q + block_q - 1) // block_kv)
    else:
        def kv_idx(q, kv):
            return kv

    q_spec = pl.BlockSpec((None, block_q, col_w),
                          lambda b, hb, q, kv: (b, q, hb))
    k_spec = pl.BlockSpec((None, block_kv, col_w),
                          lambda b, hb, q, kv: (b, kv_idx(q, kv), n_hblk + hb))
    v_spec = pl.BlockSpec((None, block_kv, col_w),
                          lambda b, hb, q, kv: (b, kv_idx(q, kv),
                                                2 * n_hblk + hb))
    out_spec = pl.BlockSpec((None, block_q, col_w),
                            lambda b, hb, q, kv: (b, q, hb))

    cost = pl.CostEstimate(
        flops=4 * B * S * S * dim,
        transcendentals=B * n_heads * S * S,
        bytes_accessed=int((B * S * dim) * (3 + nq) * x.dtype.itemsize))

    # TODO(synk): arbitrary additive mask tensors (non-causal) would be fed as
    # an extra blocked (block_q, block_kv) input; only mask=None / causal fuse.
    attn = pl.pallas_call(
        kernel,
        out_shape=jax.ShapeDtypeStruct((B, S, dim), x.dtype),
        grid=(B, n_hblk, nq, nkv),
        in_specs=[q_spec, k_spec, v_spec],
        out_specs=out_spec,
        scratch_shapes=[
            pltpu.VMEM((heads_per_block, block_q, 128), jnp.float32),  # m
            pltpu.VMEM((heads_per_block, block_q, 128), jnp.float32),  # l
            pltpu.VMEM((heads_per_block, block_q, head_dim), jnp.float32),
        ],
        compiler_params=pltpu.CompilerParams(
            dimension_semantics=("parallel", "parallel", "parallel",
                                 "arbitrary"),
            vmem_limit_bytes=_VMEM_LIMIT),
        cost_estimate=cost,
    )(qk_rot3, qk_rot3, qkv3)

    # ---- 4. output projection ----------------------------------------------
    return linear(attn.reshape(B * S, dim), wo_t).reshape(B, S, dim)


# ---------------------------------------------------------------------------
# Pure-JAX reference (mirrors the PyTorch module exactly).
# ---------------------------------------------------------------------------

def _apply_rotary_emb_ref(xq, xk, cos, sin):
    def rot(x):
        xr = x[..., 0::2]
        xi = x[..., 1::2]
        c = cos[None, :, None, :]
        s = sin[None, :, None, :]
        out_r = xr * c - xi * s
        out_i = xr * s + xi * c
        return jnp.stack([out_r, out_i], axis=-1).reshape(x.shape)
    return rot(xq), rot(xk)


def reference_forward(x, wq, wk, wv, wo, angles, n_heads):
    B, S, dim = x.shape
    head_dim = dim // n_heads
    xq = (x @ wq.T).reshape(B, S, n_heads, head_dim)
    xk = (x @ wk.T).reshape(B, S, n_heads, head_dim)
    xv = (x @ wv.T).reshape(B, S, n_heads, head_dim)
    cos, sin = jnp.cos(angles), jnp.sin(angles)
    xq, xk = _apply_rotary_emb_ref(xq, xk, cos, sin)
    q = jnp.transpose(xq, (0, 2, 1, 3))
    k = jnp.transpose(xk, (0, 2, 1, 3))
    v = jnp.transpose(xv, (0, 2, 1, 3))
    scores = (q @ jnp.swapaxes(k, 2, 3)) / math.sqrt(head_dim)
    mask = jnp.triu(jnp.full((S, S), float("-inf"), jnp.float32), k=1)
    scores = scores + mask
    probs = jax.nn.softmax(scores.astype(jnp.float32), axis=-1).astype(x.dtype)
    out = probs @ v
    out = jnp.transpose(out, (0, 2, 1, 3)).reshape(B, S, dim)
    return out @ wo.T


# ---------------------------------------------------------------------------
# main
# ---------------------------------------------------------------------------

if __name__ == "__main__":
    # dim=256, 4 heads -> head_dim=64 (two heads per 128-lane head block);
    # S=512 -> 4 q blocks x 2 kv blocks (exercises online softmax, the causal
    # block skip and the clamped KV DMA).
    B, S, dim, n_heads = 2, 512, 256, 4
    head_dim = dim // n_heads

    key = jax.random.PRNGKey(0)
    kx, kq, kk, kv, ko = jax.random.split(key, 5)

    x = jax.random.normal(kx, (B, S, dim), jnp.float32)
    bound = 1.0 / math.sqrt(dim)  # nn.Linear-style uniform init
    wq = jax.random.uniform(kq, (dim, dim), jnp.float32, -bound, bound)
    wk = jax.random.uniform(kk, (dim, dim), jnp.float32, -bound, bound)
    wv = jax.random.uniform(kv, (dim, dim), jnp.float32, -bound, bound)
    wo = jax.random.uniform(ko, (dim, dim), jnp.float32, -bound, bound)

    # llama freqs_cis precompute (theta = 10000): angles (S, head_dim//2)
    inv_freq = 1.0 / (10000.0 ** (
        jnp.arange(0, head_dim, 2, dtype=jnp.float32) / head_dim))
    angles = jnp.outer(jnp.arange(S, dtype=jnp.float32), inv_freq)

    out = attention_forward(x, wq, wk, wv, wo, angles, n_heads, causal=True)
    out = jax.block_until_ready(out)

    with jax.default_matmul_precision("highest"):
        ref = reference_forward(x, wq, wk, wv, wo, angles, n_heads)
    ref = jax.block_until_ready(ref)

    np.testing.assert_allclose(np.asarray(out), np.asarray(ref),
                               atol=1e-3, rtol=1e-3)
    print("KERNEL_OK")
</pallas_src>

<mosaic_0001>
module attributes {stable_mosaic.version = 11 : i64} {
  func.func @_matmul_kernel(%arg0: i32, %arg1: i32, %arg2: i32, %arg3: memref<512x256xf32, #tpu.memory_space<vmem>>, %arg4: memref<256x384xf32, #tpu.memory_space<vmem>>, %arg5: memref<512x384xf32, #tpu.memory_space<vmem>>, %arg6: memref<512x384xf32, #tpu.memory_space<vmem>>) attributes {dimension_semantics = [#tpu.dimension_semantics<parallel>, #tpu.dimension_semantics<parallel>, #tpu.dimension_semantics<arbitrary>], iteration_bounds = array<i64: 2, 2, 1>, scalar_prefetch = 0 : i64, scratch_operands = 1 : i64, tpu.core_type = #tpu.core_type<tc>, window_params = [{transform_indices = @transform_0, window_bounds = array<i64: 512, 256>}, {transform_indices = @transform_1, window_bounds = array<i64: 256, 384>}, {transform_indices = @transform_2, window_bounds = array<i64: 512, 384>}]} {
    %c0_i32 = arith.constant 0 : i32
    %0 = arith.cmpi eq, %arg2, %c0_i32 : i32
    %1 = arith.extui %0 : i1 to i32
    %c0_i32_0 = arith.constant 0 : i32
    %2 = arith.cmpi ne, %1, %c0_i32_0 : i32
    scf.if %2 {
      %cst_10 = arith.constant 0.000000e+00 : f32
      %12 = vector.broadcast %cst_10 : f32 to vector<512x384xf32>
      %c0_11 = arith.constant 0 : index
      %c0_12 = arith.constant 0 : index
      %13 = vector.load %arg6[%c0_11, %c0_12] : memref<512x384xf32, #tpu.memory_space<vmem>>, vector<512x384xf32>
      tpu.vector_store %arg6[%c0_11, %c0_12], %12 {strides = array<i32>} : memref<512x384xf32, #tpu.memory_space<vmem>>, vector<512x384xf32>,
    } else {
    }
    %c0 = arith.constant 0 : index
    %c0_1 = arith.constant 0 : index
    %3 = vector.load %arg6[%c0, %c0_1] : memref<512x384xf32, #tpu.memory_space<vmem>>, vector<512x384xf32>
    %c0_2 = arith.constant 0 : index
    %c0_3 = arith.constant 0 : index
    %4 = vector.load %arg3[%c0_2, %c0_3] : memref<512x256xf32, #tpu.memory_space<vmem>>, vector<512x256xf32>
    %c0_4 = arith.constant 0 : index
    %c0_5 = arith.constant 0 : index
    %5 = vector.load %arg4[%c0_4, %c0_5] : memref<256x384xf32, #tpu.memory_space<vmem>>, vector<256x384xf32>
    %cst = arith.constant dense<0.000000e+00> : vector<512x384xf32>
    %6 = tpu.matmul %4, %5, %cst {dimension_numbers = #tpu.dot_dimension_numbers<[1], [0], [0], [1], [0, 0, 1, 1], [], []>} : vector<512x256xf32>, vector<256x384xf32>, vector<512x384xf32> -> vector<512x384xf32>
    %7 = arith.addf %3, %6 : vector<512x384xf32>
    %c0_6 = arith.constant 0 : index
    %c0_7 = arith.constant 0 : index
    %8 = vector.load %arg6[%c0_6, %c0_7] : memref<512x384xf32, #tpu.memory_space<vmem>>, vector<512x384xf32>
    tpu.vector_store %arg6[%c0_6, %c0_7], %7 {strides = array<i32>} : memref<512x384xf32, #tpu.memory_space<vmem>>, vector<512x384xf32>,
    %c0_i32_8 = arith.constant 0 : i32
    %9 = arith.cmpi eq, %arg2, %c0_i32_8 : i32
    %10 = arith.extui %9 : i1 to i32
    %c0_i32_9 = arith.constant 0 : i32
    %11 = arith.cmpi ne, %10, %c0_i32_9 : i32
    scf.if %11 {
      %c0_10 = arith.constant 0 : index
      %c0_11 = arith.constant 0 : index
      %12 = vector.load %arg6[%c0_10, %c0_11] : memref<512x384xf32, #tpu.memory_space<vmem>>, vector<512x384xf32>
      %c0_12 = arith.constant 0 : index
      %c0_13 = arith.constant 0 : index
      %13 = vector.load %arg5[%c0_12, %c0_13] : memref<512x384xf32, #tpu.memory_space<vmem>>, vector<512x384xf32>
      tpu.vector_store %arg5[%c0_12, %c0_13], %12 {strides = array<i32>} : memref<512x384xf32, #tpu.memory_space<vmem>>, vector<512x384xf32>,
    } else {
    }
    return
  }
  func.func @transform_0(%arg0: i32, %arg1: i32, %arg2: i32) -> (i32, i32) {
    %c0_i32 = arith.constant 0 : i32
    return %arg0, %arg2 : i32, i32
  }
  func.func @transform_1(%arg0: i32, %arg1: i32, %arg2: i32) -> (i32, i32) {
    %c0_i32 = arith.constant 0 : i32
    return %arg2, %arg1 : i32, i32
  }
  func.func @transform_2(%arg0: i32, %arg1: i32, %arg2: i32) -> (i32, i32) {
    %c0_i32 = arith.constant 0 : i32
    return %arg0, %arg1 : i32, i32
  }
}

</mosaic_0001>

<bundles_post_ra>
// kernel: tpu_custom_call.1
= control target key start
LH: loop header
LB: loop body
LE: loop exit
PB: predicated region body
PF: predicated region fallthrough
CT: control target
= control target key end

     0   :  { %s4574_s0 = inlined_call_operand.hbm [shape: f32[1024,256], index: 0, kind: input, shape index: {}]   ;;  %s4575_s1 = inlined_call_operand.hbm [shape: f32[256,768], index: 1, kind: input, shape index: {}]   ;;  %s4576_s2 = inlined_call_operand.hbm [shape: f32[1024,768], index: 2, kind: output, shape index: {}]  }
   0x1   :  { %4605 = sst [smem:[#allocation31_spill]] %s4574_s0 }
   0x2   :  { %4606 = sst [smem:[#allocation32_spill]] %s4576_s2 }
   0x3   :  { %7 = vsyncpa [#allocation4], 0 }
   0x4   :  { %9 = vsyncpa [#allocation4 + $0x1], 0 }
   0x5   :  { %10 = vsyncpa [#allocation7], 0 }
   0x6   :  { %12 = vsyncpa [#allocation7 + $0x1], 0 }
   0x7   :  { %13 = vsyncpa [#allocation5], 0 }
   0x8   :  { %15 = vsyncpa [#allocation5 + $0x1], 0  ;;  %s3513_s9 = smov 0   ;;  %s3515_s10 = smov 0  }
   0x9   :  { %s3517_s11 = smov 0   ;;  %s3519_s12 = smov 0  }
   0xa   :  { %s3521_s13 = smov 0   ;;  %s3523_s14 = smov 0  }
   0xb   :  { %s3525_s15 = smov 0   ;;  %s3527_s16 = smov 0  }
   0xc   :  { %s3529_s17 = smov 0   ;;  %s3531_s18 = smov 0  }
   0xd   :  { %s3533_s19 = smov 0   ;;  %s3535_s20 = smov 0  }
   0xe   :  { %s3537_s21 = smov 0   ;;  %s3539_s22 = smov 0  }
   0xf LB: > { %4607 = sst [smem:[#allocation12_spill]] %s3468_s17  ;;  %s3018_s23 = sadd.s32 4294967295, %s3488_s22   ;;  %s3488_s22 = sphi %s3539_s22, %s21_s22   ;;  %s3484_s21 = sphi %s3537_s21, %s4655_s21   ;;  %s3480_s20 = sphi %s3535_s20, %s4654_s20   ;;  %s3476_s19 = sphi %s3533_s19, %s4653_s19   ;;  %s3472_s18 = sphi %s3531_s18, %s4664_s18   ;;  %s3468_s17 = sphi %s3529_s17, %s4651_s17   ;;  %s3464_s16 = sphi %s3527_s16, %s4663_s16   ;;  %s3460_s15 = sphi %s3525_s15, %s4662_s15   ;;  %s3456_s14 = sphi %s3523_s14, %s4661_s14   ;;  %s3452_s13 = sphi %s3521_s13, %s4660_s13   ;;  %s3448_s12 = sphi %s3519_s12, %s4659_s12   ;;  %s3444_s11 = sphi %s3517_s11, %s4658_s11   ;;  %s3440_s10 = sphi %s3515_s10, %s4657_s10   ;;  %s3436_s9 = sphi %s3513_s9, %s4656_s9  }
  0x10   : > { %4608 = sst [smem:[#allocation13_spill]] %s3476_s19  ;;  %s40_s24 = sadd.s32 1, %s3484_s21 }
  0x11   : > { %4609 = sst [smem:[#allocation14_spill]] %s3480_s20  ;;  %s49_s25 = sadd.s32 1, %s3468_s17 }
  0x12   : > { %4610 = sst [smem:[#allocation15_spill]] %s3484_s21  ;;  %p56_p0 = scmp.ne.s32.totalorder %s3468_s17, %s3464_s16 }
  0x13   : > { %p57_p1 = scmp.eq.s32.totalorder %s3488_s22, 0  ;;  %p62_p2 = scmp.ne.s32.totalorder %s3464_s16, %s3460_s15 }
  0x14   : > { %p3588_p3 = scmp.eq.s32.totalorder %s3018_s23, 0  ;;  %p3592_p4 = scmp.eq.s32.totalorder %s3018_s23, 3 }
  0x15   : > { %p58_p5 = por %p57_p1, %p56_p0  ;;  %p3090_p7 = scmp.lt.s32.totalorder %s3488_s22, 4 }
  0x16   : > { %p3600_p6 = por %p3588_p3, %p62_p2  ;;  %s142_s29 = sand.u32 1, %s3468_s17  }
  0x17   : > { %s3035_s30 = sshll.u32 %s3484_s21, 10  ;;  %s3022_s3 = sshll.u32 %s142_s29, 10 }
  0x18   : > { %s4614_s0 = sld [smem:[#allocation31_spill]]  ;;  %s146_s8 = scalar_lea.vmem [#allocation3], %s3022_s3 }
  0x19   : > { %s157_s15 = sshll.u32 %s146_s8, 4  ;;  %p3080_p8 = pnand %p3090_p7, %p58_p5  ;;  %s158_s15 = int_to_ptr.vmem [resolvable:$true] %s157_s15 }
  0x1a   : > { %p3027_p9 = scmp.ge.s32.totalorder %s3488_s22, 1  ;;  %p190_p10 = scmp.lt.s32.totalorder %s3488_s22, 5 }
  0x1b   : > { %s143_s23 = scalar_lea.sflag [#allocation4], %s142_s29  ;;  %s3491_s4 = smov 16  }
  0x1c   : > { %p3614_p11 = pnand %p3027_p9, %p190_p10  ;;  %s3019_s5 = sadd.s32 4294967294, %s3488_s22  }
  0x1d   : > { %s77_s8 = sadd.s32 1, %s3456_s14  ;;  %p84_p13 = scmp.ne.s32.totalorder %s3456_s14, %s3452_s13 }
  0x1e   : > { %s154_s6 = scalar_lea.hbm %s4614_s0, %s3035_s30  ;;  %s3490_s30 = smov 256  }
  0x1f   : > { %s155_s7 = sshll.u32 %s154_s6, 4  ;;  %s36_s6 = sadd.s32 1, %s3480_s20  ;;  %s156_s7 = int_to_ptr.hbm [resolvable:$true] %s155_s7 }
  0x20   : > { %3082 = dma.hbm_to_vmem [thread:$0]  (!%p3080_p8), %s156_s7, 16384, %s158_s15, %s143_s23, %s3490_s30, %s3490_s30, %s3491_s4  }
  0x21   : > { %p38_p12 = scmp.ge.s32.totalorder %s36_s6, 2  ;;  %p90_p0 = scmp.ne.s32.totalorder %s3452_s13, %s3448_s12 }
  0x22   : > { %s105_s29 = sadd.s32 1, %s3444_s11  ;;  %p3635_p2 = por %p84_p13, %p57_p1 }
  0x23   : > { %s4666_s6 = smov (%p38_p12, %s36_s6), 0  ;;  %s4668_s24 = smov (!%p38_p12, %s40_s24), %s3484_s21 }
  0x24   : > { %4616 = sst [smem:[#allocation16_spill]] %s4666_s6  ;;  %s73_s7 = ssub.s32 %s3480_s20, %s4666_s6 }
  0x25   : > { %p42_p5 = scmp.ge.s32.totalorder %s4668_s24, 2  ;;  %p75_p8 = scmp.eq.s32.totalorder %s73_s7, 0 }
  0x26   : > { %p3641_p9 = por %p90_p0, %p3588_p3  ;;  %p115_p10 = scmp.ne.s32.totalorder %s3444_s11, %s3440_s10 }
  0x27   : > { %s4670_s24 = smov (%p42_p5, %s4668_s24), 0  ;;  %p121_p13 = scmp.ne.s32.totalorder %s3440_s10, %s3436_s9 }
  0x28   : > { %4619 = sst [smem:[#allocation17_spill]] %s4670_s24  ;;  %s44_s30 = ssub.s32 %s3484_s21, %s4670_s24 }
  0x29   : > { %s3650_s23 = scalar_select %p75_p8, %s3456_s14, %s77_s8  }
  0x2a   : > { %p3656_p1 = por %p3592_p4, %p115_p10  ;;  %p47_p12 = scmp.eq.s32.totalorder %s44_s30, 0 }
  0x2b   : > { %4620 = sst [smem:[#allocation18_spill]] %s3650_s23  ;;  %s102_s26 = sor.u32 %s73_s7, %s44_s30 }
  0x2c   : > { %p103_p3 = scmp.eq.s32.totalorder %s102_s26, 0  ;;  %p122_p0 = scmp.eq.s32.totalorder %s3019_s5, 3 }
  0x2d   : > { %s3665_s0 = scalar_select %p47_p12, %s3468_s17, %s49_s25  }
  0x2e   : > { %s3668_s6 = scalar_select %p103_p3, %s3444_s11, %s105_s29  }
  0x2f   : > { %4622 = sst [smem:[#allocation19_spill]] %s3665_s0  ;;  %s167_s2 = sand.u32 1, %s3456_s14  }
  0x30   : > { %s3069_s19 = smul.u32 768, %s167_s2  ;;  %p3671_p5 = por %p122_p0, %p121_p13 }
  0x31   : > { %s3036_s27 = smul.u32 24, %s3480_s20  ;;  %p3083_p4 = pnand %p3090_p7, %p3635_p2 }
  0x32   : > { %s171_s26 = scalar_lea.vmem [#allocation6], %s3069_s19  ;;  %s168_s5 = scalar_lea.sflag [#allocation7], %s167_s2 }
  0x33   : > { %s179_s30 = scalar_lea.hbm %s4575_s1, %s3036_s27  ;;  %s182_s25 = sshll.u32 %s171_s26, 4  ;;  %s183_s25 = int_to_ptr.vmem [resolvable:$true] %s182_s25 }
  0x34   : > { %s180_s21 = sshll.u32 %s179_s30, 4  ;;  %s3492_s29 = smov 768   ;;  %s181_s21 = int_to_ptr.hbm [resolvable:$true] %s180_s21 }
  0x35   : > { %s3493_s0 = smov 384   ;;  %s3494_s17 = smov 24  }
  0x36   : > { %3085 = dma.hbm_to_vmem [thread:$0]  (!%p3083_p4), %s181_s21, 12288, %s183_s25, %s168_s5, %s3492_s29, %s3493_s0, %s3494_s17  }
  0x37   : > { %194 = sbr.rel (%p3614_p11) target bundleno = 1001 (0x3e9), region = 28 }
  0x3c   : > { %s196_s15 = sand.u32 1, %s3464_s16  }
  0x3d   : > { %s3028_s20 = sshll.u32 %s196_s15, 10  ;;  %s197_s23 = scalar_lea.sflag [#allocation4], %s196_s15 }
  0x3e   : > { %s3686_s24 = scalar_lea.vmem [#allocation3], %s3028_s20 }
  0x3f   : > { %3423 = dma.done.wait (%p3600_p6), %s197_s23, 16384  }
  0x40   : > { %3425 = vsyncadd (%p3600_p6), %s197_s23, 4294950912  ;;  %s206_s2 = sand.u32 1, %s3452_s13  }
  0x41   : > { %s3070_s19 = smul.u32 768, %s206_s2  ;;  %s207_s0 = scalar_lea.sflag [#allocation7], %s206_s2 }
  0x43   : > { %s3693_s17 = scalar_lea.vmem [#allocation6], %s3070_s19 }
  0x44   : > { %3427 = dma.done.wait (%p3641_p9), %s207_s0, 12288  }
  0x45   : > { %3429 = vsyncadd (%p3641_p9), %s207_s0, 4294955008  ;;  %v804_v0 = vld [vmem:[%s3693_s17 + $0x168] sm:$0xff]  ;;  %v801_v2 = vld [vmem:[%s3693_s17 + $0x150] sm:$0xff]  ;;  %s234_s20 = sand.u32 1, %s3440_s10   ;;  %s4646_s3 = sld [smem:[#allocation13_spill]] }
  0x46   : > { %v852_v1 = vld [vmem:[%s3693_s17 + $0x2e8] sm:$0xff]  ;;  %3037 = vmatpush.msra.mxu2 %v804_v0  ;;  %v849_v3 = vld [vmem:[%s3693_s17 + $0x2d0] sm:$0xff]  ;;  %v798_v4 = vld [vmem:[%s3693_s17 + $0x138] sm:$0xff]  ;;  %855 = vmatpush.msra.mxu0 %v804_v0  ;;  %s3071_s21 = smul.u32 1536, %s234_s20  ;;  %s4647_s26 = sld [smem:[#allocation32_spill]] }
  0x47   : > { %3053 = vmatpush.msra.mxu3 %v852_v1  ;;  %v846_v5 = vld [vmem:[%s3693_s17 + $0x2b8] sm:$0xff]  ;;  %1064 = vmatpush.msra.mxu1 %v852_v1  ;;  %v795_v6 = vld [vmem:[%s3693_s17 + $0x120] sm:$0xff]  ;;  %v792_v8 = vld [vmem:[%s3693_s17 + $0x108] sm:$0xff]  ;;  %s2889_s12 = smul.u32 3, %s3472_s18  ;;  %s2881_s15 = scalar_lea.sflag [#allocation5], %s234_s20 }
  0x48   : > { %3038 = vmatpush.msra.mxu2 %v801_v2  ;;  %v843_v7 = vld [vmem:[%s3693_s17 + $0x2a0] sm:$0xff]  ;;  %856 = vmatpush.msra.mxu0 %v801_v2  ;;  %v840_v9 = vld [vmem:[%s3693_s17 + $0x288] sm:$0xff]  ;;  %v789_v10 = vld [vmem:[%s3693_s17 + $0xf0] sm:$0xff]  ;;  %s3944_s28 = scalar_lea.vmem [#allocation8], %s3071_s21 }
  0x49   : > { %3054 = vmatpush.msra.mxu3 %v849_v3  ;;  %1065 = vmatpush.msra.mxu1 %v849_v3  ;;  %v837_v11 = vld [vmem:[%s3693_s17 + $0x270] sm:$0xff]  ;;  %v786_v12 = vld [vmem:[%s3693_s17 + $0xd8] sm:$0xff]  ;;  %v783_v14 = vld [vmem:[%s3693_s17 + $0xc0] sm:$0xff]  ;;  %s2896_s5 = sshll.u32 %s3944_s28, 4  ;;  %s2897_s5 = int_to_ptr.vmem [resolvable:$true] %s2896_s5 }
  0x4a   : > { %3039 = vmatpush.msra.mxu2 %v798_v4  ;;  %857 = vmatpush.msra.mxu0 %v798_v4  ;;  %v834_v13 = vld [vmem:[%s3693_s17 + $0x258] sm:$0xff]  ;;  %v831_v15 = vld [vmem:[%s3693_s17 + $0x240] sm:$0xff]  ;;  %v780_v16 = vld [vmem:[%s3693_s17 + $0xa8] sm:$0xff] }
  0x4b   : > { %3055 = vmatpush.msra.mxu3 %v846_v5  ;;  %1066 = vmatpush.msra.mxu1 %v846_v5  ;;  %v828_v17 = vld [vmem:[%s3693_s17 + $0x228] sm:$0xff]  ;;  %v777_v18 = vld [vmem:[%s3693_s17 + $0x90] sm:$0xff]  ;;  %v774_v20 = vld [vmem:[%s3693_s17 + $0x78] sm:$0xff]  ;;  %s3072_s23 = smul.u32 384, %s4646_s3 }
  0x4c   : > { %3040 = vmatpush.msra.mxu2 %v795_v6  ;;  %858 = vmatpush.msra.mxu0 %v795_v6  ;;  %v825_v19 = vld [vmem:[%s3693_s17 + $0x210] sm:$0xff]  ;;  %v822_v21 = vld [vmem:[%s3693_s17 + $0x1f8] sm:$0xff]  ;;  %v771_v22 = vld [vmem:[%s3693_s17 + $0x60] sm:$0xff] }
  0x4d   : > { %3056 = vmatpush.msra.mxu3 %v843_v7  ;;  %1067 = vmatpush.msra.mxu1 %v843_v7  ;;  %v819_v23 = vld [vmem:[%s3693_s17 + $0x1e0] sm:$0xff]  ;;  %v768_v24 = vld [vmem:[%s3693_s17 + $0x48] sm:$0xff]  ;;  %v765_v26 = vld [vmem:[%s3693_s17 + $0x30] sm:$0xff]  ;;  %s2893_s27 = sadd.s32 %s3072_s23, %s2889_s12 }
  0x4e   : > { %3041 = vmatpush.msra.mxu2 %v792_v8  ;;  %859 = vmatpush.msra.mxu0 %v792_v8  ;;  %v816_v25 = vld [vmem:[%s3693_s17 + $0x1c8] sm:$0xff]  ;;  %v813_v27 = vld [vmem:[%s3693_s17 + $0x1b0] sm:$0xff]  ;;  %v762_v28 = vld [vmem:[%s3693_s17 + $0x18] sm:$0xff]  ;;  %s3031_s7 = sshll.u32 %s2893_s27, 3 }
  0x4f   : > { %3057 = vmatpush.msra.mxu3 %v840_v9  ;;  %1068 = vmatpush.msra.mxu1 %v840_v9  ;;  %v810_v29 = vld [vmem:[%s3693_s17 + $0x198] sm:$0xff]  ;;  %v759_v30 = vld [vmem:[%s3693_s17] sm:$0xff]  ;;  %v696_v33 = vld [vmem:[%s3686_s24 + $0x208] sm:$0xff]  ;;  %s2895_s25 = scalar_lea.hbm %s4647_s26, %s3031_s7 }
  0x50   : > { %3042 = vmatpush.msra.mxu2 %v789_v10  ;;  %860 = vmatpush.msra.mxu0 %v789_v10  ;;  %v807_v31 = vld [vmem:[%s3693_s17 + $0x180] sm:$0xff]  ;;  %v805_v34 = vld [vmem:[%s3693_s17 + $0x170] sm:$0xff]  ;;  %v3739_v37 = vld [vmem:[%s3686_s24 + $0x8] sm:$0xff]  ;;  %s2898_s29 = sshll.u32 %s2895_s25, 4  ;;  %s2899_s29 = int_to_ptr.hbm [resolvable:$true] %s2898_s29 }
  0x51   : > { %3058 = vmatpush.msra.mxu3 %v837_v11  ;;  %1069 = vmatpush.msra.mxu1 %v837_v11  ;;  %v695_v32 = vld [vmem:[%s3686_s24 + $0x200] sm:$0xff]  ;;  %v853_v35 = vld [vmem:[%s3693_s17 + $0x2f0] sm:$0xff]  ;;  %v806_v38 = vld [vmem:[%s3693_s17 + $0x178] sm:$0xff] }
  0x52   : > { %3043 = vmatpush.msra.mxu2 %v786_v12  ;;  %861 = vmatpush.msra.mxu0 %v786_v12  ;;  %v3736_v36 = vld [vmem:[%s3686_s24] sm:$0xff]  ;;  %v854_v39 = vld [vmem:[%s3693_s17 + $0x2f8] sm:$0xff]  ;;  %v697_v46 = vld [vmem:[%s3686_s24 + $0x210] sm:$0xff] }
  0x53   : > { %3059 = vmatpush.msra.mxu3 %v834_v13  ;;  %1070 = vmatpush.msra.mxu1 %v834_v13  ;;  %v802_v40 = vld [vmem:[%s3693_s17 + $0x158] sm:$0xff]  ;;  %v803_v42 = vld [vmem:[%s3693_s17 + $0x160] sm:$0xff]  ;;  %v800_v48 = vld [vmem:[%s3693_s17 + $0x148] sm:$0xff] }
  0x54   : > { %3044 = vmatpush.msra.mxu2 %v783_v14  ;;  %862 = vmatpush.msra.mxu0 %v783_v14  ;;  %v850_v41 = vld [vmem:[%s3693_s17 + $0x2d8] sm:$0xff]  ;;  %v851_v43 = vld [vmem:[%s3693_s17 + $0x2e0] sm:$0xff]  ;;  %v848_v49 = vld [vmem:[%s3693_s17 + $0x2c8] sm:$0xff] }
  0x55   : > { %3060 = vmatpush.msra.mxu3 %v831_v15  ;;  %1071 = vmatpush.msra.mxu1 %v831_v15  ;;  %v799_v44 = vld [vmem:[%s3693_s17 + $0x140] sm:$0xff]  ;;  %v698_v47 = vld [vmem:[%s3686_s24 + $0x218] sm:$0xff]  ;;  %v3756_v50 = vld [vmem:[%s3686_s24 + $0x10] sm:$0xff] }
  0x56   : > { %3045 = vmatpush.msra.mxu2 %v780_v16  ;;  %863 = vmatpush.msra.mxu0 %v780_v16  ;;  %v847_v45 = vld [vmem:[%s3693_s17 + $0x2c0] sm:$0xff]  ;;  %v3759_v51 = vld [vmem:[%s3686_s24 + $0x18] sm:$0xff]  ;;  %v700_v53 = vld [vmem:[%s3686_s24 + $0x228] sm:$0xff] }
  0x57   : > { %3061 = vmatpush.msra.mxu3 %v828_v17  ;;  %1072 = vmatpush.msra.mxu1 %v828_v17  ;;  %v699_v52 = vld [vmem:[%s3686_s24 + $0x220] sm:$0xff]  ;;  %v3769_v55 = vld [vmem:[%s3686_s24 + $0x28] sm:$0xff]  ;;  %v797_v58 = vld [vmem:[%s3693_s17 + $0x130] sm:$0xff] }
  0x58   : > { %3046 = vmatpush.msra.mxu2 %v777_v18  ;;  %864 = vmatpush.msra.mxu0 %v777_v18  ;;  %v3766_v54 = vld [vmem:[%s3686_s24 + $0x20] sm:$0xff]  ;;  %v796_v56 = vld [vmem:[%s3693_s17 + $0x128] sm:$0xff]  ;;  %v845_v59 = vld [vmem:[%s3693_s17 + $0x2b0] sm:$0xff] }
  0x59   : > { %3062 = vmatpush.msra.mxu3 %v825_v19  ;;  %1073 = vmatpush.msra.mxu1 %v825_v19  ;;  %v844_v57 = vld [vmem:[%s3693_s17 + $0x2a8] sm:$0xff]  ;;  %v701_v60 = vld [vmem:[%s3686_s24 + $0x230] sm:$0xff]  ;;  %v702_v61 = vld [vmem:[%s3686_s24 + $0x238] sm:$0xff] }
  0x5a   : > { %3047 = vmatpush.msra.mxu2 %v774_v20  ;;  %865 = vmatpush.msra.mxu0 %v774_v20  ;;  %v3780_v62 = vld [vmem:[%s3686_s24 + $0x30] sm:$0xff]  ;;  %v3783_v63 = vld [vmem:[%s3686_s24 + $0x38] sm:$0xff]  ;;  %v703_v0 = vld [vmem:[%s3686_s24 + $0x240] sm:$0xff] }
  0x5b   : > { %3063 = vmatpush.msra.mxu3 %v822_v21  ;;  %1074 = vmatpush.msra.mxu1 %v822_v21  ;;  %v704_v1 = vld [vmem:[%s3686_s24 + $0x248] sm:$0xff]  ;;  %v3790_v2 = vld [vmem:[%s3686_s24 + $0x40] sm:$0xff]  ;;  %v793_v4 = vld [vmem:[%s3693_s17 + $0x110] sm:$0xff] }
  0x5c   : > { %3048 = vmatpush.msra.mxu2 %v771_v22  ;;  %866 = vmatpush.msra.mxu0 %v771_v22  ;;  %v3793_v3 = vld [vmem:[%s3686_s24 + $0x48] sm:$0xff]  ;;  %v841_v5 = vld [vmem:[%s3693_s17 + $0x290] sm:$0xff]  ;;  %v794_v6 = vld [vmem:[%s3693_s17 + $0x118] sm:$0xff] }
  0x5d   : > { %3064 = vmatpush.msra.mxu3 %v819_v23  ;;  %1075 = vmatpush.msra.mxu1 %v819_v23  ;;  %v842_v7 = vld [vmem:[%s3693_s17 + $0x298] sm:$0xff]  ;;  %v705_v8 = vld [vmem:[%s3686_s24 + $0x250] sm:$0xff]  ;;  %v707_v12 = vld [vmem:[%s3686_s24 + $0x260] sm:$0xff] }
  0x5e   : > { %3049 = vmatpush.msra.mxu2 %v768_v24  ;;  %867 = vmatpush.msra.mxu0 %v768_v24  ;;  %v706_v9 = vld [vmem:[%s3686_s24 + $0x258] sm:$0xff]  ;;  %v3804_v10 = vld [vmem:[%s3686_s24 + $0x50] sm:$0xff]  ;;  %v708_v13 = vld [vmem:[%s3686_s24 + $0x268] sm:$0xff] }
  0x5f   : > { %3065 = vmatpush.msra.mxu3 %v816_v25  ;;  %1076 = vmatpush.msra.mxu1 %v816_v25  ;;  %v3807_v11 = vld [vmem:[%s3686_s24 + $0x58] sm:$0xff]  ;;  %v3814_v14 = vld [vmem:[%s3686_s24 + $0x60] sm:$0xff]  ;;  %v3817_v15 = vld [vmem:[%s3686_s24 + $0x68] sm:$0xff] }
  0x60   : > { %3050 = vmatpush.msra.mxu2 %v765_v26  ;;  %868 = vmatpush.msra.mxu0 %v765_v26  ;;  %v790_v16 = vld [vmem:[%s3693_s17 + $0xf8] sm:$0xff]  ;;  %v791_v18 = vld [vmem:[%s3693_s17 + $0x100] sm:$0xff]  ;;  %v709_v20 = vld [vmem:[%s3686_s24 + $0x270] sm:$0xff] }
  0x61   : > { %3066 = vmatpush.msra.mxu3 %v813_v27  ;;  %1077 = vmatpush.msra.mxu1 %v813_v27  ;;  %v838_v17 = vld [vmem:[%s3693_s17 + $0x278] sm:$0xff]  ;;  %v839_v19 = vld [vmem:[%s3693_s17 + $0x280] sm:$0xff]  ;;  %v3828_v22 = vld [vmem:[%s3686_s24 + $0x70] sm:$0xff] }
  0x62   : > { %3051 = vmatpush.msra.mxu2 %v762_v28  ;;  %869 = vmatpush.msra.mxu0 %v762_v28  ;;  %v710_v21 = vld [vmem:[%s3686_s24 + $0x278] sm:$0xff]  ;;  %v711_v24 = vld [vmem:[%s3686_s24 + $0x280] sm:$0xff]  ;;  %v712_v25 = vld [vmem:[%s3686_s24 + $0x288] sm:$0xff] }
  0x63   : > { %3067 = vmatpush.msra.mxu3 %v810_v29  ;;  %1078 = vmatpush.msra.mxu1 %v810_v29  ;;  %v3831_v23 = vld [vmem:[%s3686_s24 + $0x78] sm:$0xff]  ;;  %v3838_v26 = vld [vmem:[%s3686_s24 + $0x80] sm:$0xff]  ;;  %v3841_v27 = vld [vmem:[%s3686_s24 + $0x88] sm:$0xff] }
  0x64   : > { %3052 = vmatpush.msra.mxu2 %v759_v30  ;;  %870 = vmatpush.msra.mxu0 %v759_v30  ;;  %v787_v28 = vld [vmem:[%s3693_s17 + $0xe0] sm:$0xff]  ;;  %v788_v30 = vld [vmem:[%s3693_s17 + $0xe8] sm:$0xff] }
  0x65   : > { %3068 = vmatpush.msra.mxu3 %v807_v31  ;;  %967 = vmatmul.f32.vlgmr.msra.gmra.mxu2 %v695_v32  ;;  %v835_v29 = vld [vmem:[%s3693_s17 + $0x260] sm:$0xff]  ;;  %v713_v32 = vld [vmem:[%s3686_s24 + $0x290] sm:$0xff] }
  0x66   : > { %1176 = vmatmul.f32.vlgmr.msra.gmra.mxu3 %v696_v33  ;;  %1273 = vmatpush.msrb.mxu2 %v805_v34  ;;  %v714_v33 = vld [vmem:[%s3686_s24 + $0x298] sm:$0xff]  ;;  %v3852_v34 = vld [vmem:[%s3686_s24 + $0x90] sm:$0xff] }
  0x67   : > { %1482 = vmatpush.msrb.mxu3 %v853_v35  ;;  %1079 = vmatpush.msra.mxu1 %v807_v31  ;;  %v836_v31 = vld [vmem:[%s3693_s17 + $0x268] sm:$0xff]  ;;  %v3855_v35 = vld [vmem:[%s3686_s24 + $0x98] sm:$0xff] }
  0x68   : > { %871 = vmatmul.f32.vlgmr.msra.gmra.mxu0 %v3736_v36  ;;  %1080 = vmatmul.f32.vlgmr.msra.gmra.mxu1 %v3739_v37 }
  0x69   : > { %1691 = vmatpush.msrb.mxu0 %v806_v38  ;;  %1900 = vmatpush.msrb.mxu1 %v854_v39  ;;  %v715_v38 = vld [vmem:[%s3686_s24 + $0x2a0] sm:$0xff]  ;;  %v716_v39 = vld [vmem:[%s3686_s24 + $0x2a8] sm:$0xff] }
  0x6a   : > { %1274 = vmatpush.msrb.mxu2 %v802_v40  ;;  %1483 = vmatpush.msrb.mxu3 %v850_v41  ;;  %v3862_v40 = vld [vmem:[%s3686_s24 + $0xa0] sm:$0xff]  ;;  %v3865_v41 = vld [vmem:[%s3686_s24 + $0xa8] sm:$0xff] }
  0x6b   : > { %1692 = vmatpush.msrb.mxu0 %v803_v42  ;;  %1901 = vmatpush.msrb.mxu1 %v851_v43  ;;  %v784_v42 = vld [vmem:[%s3693_s17 + $0xc8] sm:$0xff] }
  0x6c   : > { %1275 = vmatpush.msrb.mxu2 %v799_v44  ;;  %1484 = vmatpush.msrb.mxu3 %v847_v45  ;;  %v832_v43 = vld [vmem:[%s3693_s17 + $0x248] sm:$0xff]  ;;  %v785_v44 = vld [vmem:[%s3693_s17 + $0xd0] sm:$0xff] }
  0x6d   : > { %970 = vmatmul.f32.gmra.mxu2 %v697_v46  ;;  %1693 = vmatpush.msrb.mxu0 %v800_v48  ;;  %v833_v45 = vld [vmem:[%s3693_s17 + $0x250] sm:$0xff] }
  0x6e   : > { %1179 = vmatmul.f32.gmra.mxu3 %v698_v47  ;;  %1902 = vmatpush.msrb.mxu1 %v848_v49  ;;  %v717_v46 = vld [vmem:[%s3686_s24 + $0x2b0] sm:$0xff]  ;;  %v718_v47 = vld [vmem:[%s3686_s24 + $0x2b8] sm:$0xff] }
  0x6f   : > { %1276 = vmatpush.msrb.mxu2 %v796_v56  ;;  %1485 = vmatpush.msrb.mxu3 %v844_v57  ;;  %v3876_v48 = vld [vmem:[%s3686_s24 + $0xb0] sm:$0xff]  ;;  %v3879_v49 = vld [vmem:[%s3686_s24 + $0xb8] sm:$0xff]  ;;  %v3886_v56 = vld [vmem:[%s3686_s24 + $0xc0] sm:$0xff] }
  0x70   : > { %874 = vmatmul.f32.gmra.mxu0 %v3756_v50  ;;  %1083 = vmatmul.f32.gmra.mxu1 %v3759_v51  ;;  %v3889_v57 = vld [vmem:[%s3686_s24 + $0xc8] sm:$0xff] }
  0x71   : > { %1694 = vmatpush.msrb.mxu0 %v797_v58  ;;  %1903 = vmatpush.msrb.mxu1 %v845_v59  ;;  %v781_v58 = vld [vmem:[%s3693_s17 + $0xb0] sm:$0xff] }
  0x72   : > { %1277 = vmatpush.msrb.mxu2 %v793_v4  ;;  %1486 = vmatpush.msrb.mxu3 %v841_v5  ;;  %v829_v59 = vld [vmem:[%s3693_s17 + $0x230] sm:$0xff]  ;;  %v3903_v5 = vld [vmem:[%s3686_s24 + $0xd8] sm:$0xff] }
  0x73   : > { %1695 = vmatpush.msrb.mxu0 %v794_v6  ;;  %1904 = vmatpush.msrb.mxu1 %v842_v7  ;;  %v3900_v4 = vld [vmem:[%s3686_s24 + $0xd0] sm:$0xff]  ;;  %v723_v6 = vld [vmem:[%s3686_s24 + $0x2e0] sm:$0xff]  ;;  %v724_v7 = vld [vmem:[%s3686_s24 + $0x2e8] sm:$0xff] }
  0x74   : > { %1278 = vmatpush.msrb.mxu2 %v790_v16  ;;  %1487 = vmatpush.msrb.mxu3 %v838_v17  ;;  %v725_v16 = vld [vmem:[%s3686_s24 + $0x2f0] sm:$0xff]  ;;  %v726_v17 = vld [vmem:[%s3686_s24 + $0x2f8] sm:$0xff] }
  0x75   : > { %973 = vmatmul.f32.gmra.mxu2 %v699_v52  ;;  %1696 = vmatpush.msrb.mxu0 %v791_v18  ;;  %v719_v52 = vld [vmem:[%s3686_s24 + $0x2c0] sm:$0xff] }
  0x76   : > { %1182 = vmatmul.f32.gmra.mxu3 %v700_v53  ;;  %1905 = vmatpush.msrb.mxu1 %v839_v19  ;;  %v720_v53 = vld [vmem:[%s3686_s24 + $0x2c8] sm:$0xff]  ;;  %v779_v18 = vld [vmem:[%s3693_s17 + $0xa0] sm:$0xff] }
  0x77   : > { %1279 = vmatpush.msrb.mxu2 %v787_v28  ;;  %1488 = vmatpush.msrb.mxu3 %v835_v29  ;;  %v827_v19 = vld [vmem:[%s3693_s17 + $0x220] sm:$0xff] }
  0x78   : > { %877 = vmatmul.f32.gmra.mxu0 %v3766_v54  ;;  %1086 = vmatmul.f32.gmra.mxu1 %v3769_v55  ;;  %v3937_v28 = vld [vmem:[%s3686_s24 + $0x100] sm:$0xff] }
  0x79   : > { %1697 = vmatpush.msrb.mxu0 %v788_v30  ;;  %1906 = vmatpush.msrb.mxu1 %v836_v31  ;;  %v3940_v31 = vld [vmem:[%s3686_s24 + $0x108] sm:$0xff] }
  0x7a   : > { %1280 = vmatpush.msrb.mxu2 %v784_v42  ;;  %1489 = vmatpush.msrb.mxu3 %v832_v43 }
  0x7b   : > { %1698 = vmatpush.msrb.mxu0 %v785_v44  ;;  %1907 = vmatpush.msrb.mxu1 %v833_v45  ;;  %v729_v44 = vld [vmem:[%s3686_s24 + $0x310] sm:$0xff]  ;;  %v730_v45 = vld [vmem:[%s3686_s24 + $0x318] sm:$0xff] }
  0x7c   : > { %1281 = vmatpush.msrb.mxu2 %v781_v58  ;;  %1490 = vmatpush.msrb.mxu3 %v829_v59  ;;  %v3955_v58 = vld [vmem:[%s3686_s24 + $0x110] sm:$0xff]  ;;  %v3958_v59 = vld [vmem:[%s3686_s24 + $0x118] sm:$0xff] }
  0x7d   : > { %976 = vmatmul.f32.gmra.mxu2 %v701_v60  ;;  %v721_v60 = vld [vmem:[%s3686_s24 + $0x2d0] sm:$0xff] }
  0x7e   : > { %1185 = vmatmul.f32.gmra.mxu3 %v702_v61  ;;  %v722_v61 = vld [vmem:[%s3686_s24 + $0x2d8] sm:$0xff] }
  0x80   : > { %880 = vmatmul.f32.gmra.mxu0 %v3780_v62  ;;  %1089 = vmatmul.f32.gmra.mxu1 %v3783_v63 }
  0x85   : > { %979 = vmatmul.f32.gmra.mxu2 %v703_v0  ;;  %v782_v0 = vld [vmem:[%s3693_s17 + $0xb8] sm:$0xff] }
  0x86   : > { %1188 = vmatmul.f32.gmra.mxu3 %v704_v1  ;;  %v830_v1 = vld [vmem:[%s3693_s17 + $0x238] sm:$0xff]  ;;  %1699 = vmatpush.msrb.mxu0 %v782_v0 }
  0x87   : > { %1908 = vmatpush.msrb.mxu1 %v830_v1 }
  0x88   : > { %883 = vmatmul.f32.gmra.mxu0 %v3790_v2  ;;  %1092 = vmatmul.f32.gmra.mxu1 %v3793_v3 }
  0x89   : > { %1700 = vmatpush.msrb.mxu0 %v779_v18  ;;  %1909 = vmatpush.msrb.mxu1 %v827_v19  ;;  %v772_v18 = vld [vmem:[%s3693_s17 + $0x68] sm:$0xff] }
  0x8a   : > { %v820_v19 = vld [vmem:[%s3693_s17 + $0x1e8] sm:$0xff] }
  0x8d   : > { %982 = vmatmul.f32.gmra.mxu2 %v705_v8  ;;  %v3910_v8 = vld [vmem:[%s3686_s24 + $0xe0] sm:$0xff] }
  0x8e   : > { %1191 = vmatmul.f32.gmra.mxu3 %v706_v9  ;;  %v3913_v9 = vld [vmem:[%s3686_s24 + $0xe8] sm:$0xff] }
  0x90   : > { %886 = vmatmul.f32.gmra.mxu0 %v3804_v10  ;;  %1095 = vmatmul.f32.gmra.mxu1 %v3807_v11 }
  0x95   : > { %985 = vmatmul.f32.gmra.mxu2 %v707_v12  ;;  %v778_v12 = vld [vmem:[%s3693_s17 + $0x98] sm:$0xff] }
  0x96   : > { %1194 = vmatmul.f32.gmra.mxu3 %v708_v13  ;;  %v826_v13 = vld [vmem:[%s3693_s17 + $0x218] sm:$0xff]  ;;  %1282 = vmatpush.msrb.mxu2 %v778_v12  ;;  %v3967_v12 = vld [vmem:[%s3686_s24 + $0x120] sm:$0xff] }
  0x97   : > { %1491 = vmatpush.msrb.mxu3 %v826_v13 }
  0x98   : > { %889 = vmatmul.f32.gmra.mxu0 %v3814_v14  ;;  %1098 = vmatmul.f32.gmra.mxu1 %v3817_v15 }
  0x9d   : > { %988 = vmatmul.f32.gmra.mxu2 %v709_v20  ;;  %v3924_v20 = vld [vmem:[%s3686_s24 + $0xf0] sm:$0xff] }
  0x9e   : > { %1197 = vmatmul.f32.gmra.mxu3 %v710_v21  ;;  %v3927_v21 = vld [vmem:[%s3686_s24 + $0xf8] sm:$0xff] }
  0xa0   : > { %892 = vmatmul.f32.gmra.mxu0 %v3828_v22  ;;  %1101 = vmatmul.f32.gmra.mxu1 %v3831_v23 }
  0xa5   : > { %991 = vmatmul.f32.gmra.mxu2 %v711_v24  ;;  %v727_v24 = vld [vmem:[%s3686_s24 + $0x300] sm:$0xff] }
  0xa6   : > { %1200 = vmatmul.f32.gmra.mxu3 %v712_v25  ;;  %v728_v25 = vld [vmem:[%s3686_s24 + $0x308] sm:$0xff] }
  0xa8   : > { %895 = vmatmul.f32.gmra.mxu0 %v3838_v26  ;;  %1104 = vmatmul.f32.gmra.mxu1 %v3841_v27 }
  0xad   : > { %994 = vmatmul.f32.gmra.mxu2 %v713_v32  ;;  %v775_v32 = vld [vmem:[%s3693_s17 + $0x80] sm:$0xff] }
  0xae   : > { %1203 = vmatmul.f32.gmra.mxu3 %v714_v33  ;;  %v823_v33 = vld [vmem:[%s3693_s17 + $0x200] sm:$0xff]  ;;  %1283 = vmatpush.msrb.mxu2 %v775_v32  ;;  %v733_v32 = vld [vmem:[%s3686_s24 + $0x330] sm:$0xff] }
  0xaf   : > { %1492 = vmatpush.msrb.mxu3 %v823_v33  ;;  %v734_v33 = vld [vmem:[%s3686_s24 + $0x338] sm:$0xff] }
  0xb0   : > { %898 = vmatmul.f32.gmra.mxu0 %v3852_v34  ;;  %1107 = vmatmul.f32.gmra.mxu1 %v3855_v35 }
  0xb1   : > { %1284 = vmatpush.msrb.mxu2 %v772_v18  ;;  %1493 = vmatpush.msrb.mxu3 %v820_v19 }
  0xb5   : > { %997 = vmatmul.f32.gmra.mxu2 %v715_v38 }
  0xb6   : > { %1206 = vmatmul.f32.gmra.mxu3 %v716_v39 }
  0xb8   : > { %901 = vmatmul.f32.gmra.mxu0 %v3862_v40  ;;  %1110 = vmatmul.f32.gmra.mxu1 %v3865_v41 }
  0xbd   : > { %1000 = vmatmul.f32.gmra.mxu2 %v717_v46  ;;  %v776_v46 = vld [vmem:[%s3693_s17 + $0x88] sm:$0xff] }
  0xbe   : > { %1209 = vmatmul.f32.gmra.mxu3 %v718_v47  ;;  %v824_v47 = vld [vmem:[%s3693_s17 + $0x208] sm:$0xff]  ;;  %1701 = vmatpush.msrb.mxu0 %v776_v46 }
  0xbf   : > { %1910 = vmatpush.msrb.mxu1 %v824_v47 }
  0xc0   : > { %904 = vmatmul.f32.gmra.mxu0 %v3876_v48  ;;  %1113 = vmatmul.f32.gmra.mxu1 %v3879_v49 }
  0xc5   : > { %1003 = vmatmul.f32.gmra.mxu2 %v719_v52 }
  0xc6   : > { %1212 = vmatmul.f32.gmra.mxu3 %v720_v53 }
  0xc8   : > { %907 = vmatmul.f32.gmra.mxu0 %v3886_v56  ;;  %1116 = vmatmul.f32.gmra.mxu1 %v3889_v57 }
  0xcd   : > { %1006 = vmatmul.f32.gmra.mxu2 %v721_v60 }
  0xce   : > { %1215 = vmatmul.f32.gmra.mxu3 %v722_v61 }
  0xd0   : > { %910 = vmatmul.f32.gmra.mxu0 %v3900_v4  ;;  %1119 = vmatmul.f32.gmra.mxu1 %v3903_v5 }
  0xd5   : > { %1009 = vmatmul.f32.gmra.mxu2 %v723_v6  ;;  %v731_v6 = vld [vmem:[%s3686_s24 + $0x320] sm:$0xff] }
  0xd6   : > { %1218 = vmatmul.f32.gmra.mxu3 %v724_v7  ;;  %v732_v7 = vld [vmem:[%s3686_s24 + $0x328] sm:$0xff] }
  0xd8   : > { %913 = vmatmul.f32.gmra.mxu0 %v3910_v8  ;;  %1122 = vmatmul.f32.gmra.mxu1 %v3913_v9 }
  0xdd   : > { %1012 = vmatmul.f32.gmra.mxu2 %v725_v16 }
  0xde   : > { %1221 = vmatmul.f32.gmra.mxu3 %v726_v17  ;;  %v3970_v17 = vld [vmem:[%s3686_s24 + $0x128] sm:$0xff] }
  0xe0   : > { %916 = vmatmul.f32.gmra.mxu0 %v3924_v20  ;;  %1125 = vmatmul.f32.gmra.mxu1 %v3927_v21 }
  0xe5   : > { %1015 = vmatmul.f32.gmra.mxu2 %v727_v24  ;;  %v872_v29 = vpop.f32.mrf.mxu0  ;;  %v1081_v30 = vpop.f32.mrf.mxu1 }
  0xe6   : > { %1224 = vmatmul.f32.gmra.mxu3 %v728_v25  ;;  %v1082_v38 = vadd.f32 %v1081_v30, %v872_v29 }
  0xe8   : > { %v968_v39 = vpop.f32.mrf.mxu2  ;;  %2688 = vst [vmem:[%s3944_s28] sm:$0xff] %v1082_v38  ;;  %919 = vmatmul.f32.gmra.mxu0 %v3937_v28  ;;  %1128 = vmatmul.f32.gmra.mxu1 %v3940_v31  ;;  %v773_v38 = vld [vmem:[%s3693_s17 + $0x70] sm:$0xff] }
  0xe9   : > { %v1177_v42 = vpop.f32.mrf.mxu3  ;;  %1702 = vmatpush.msrb.mxu0 %v773_v38 }
  0xea   : > { %v1178_v43 = vadd.f32 %v1177_v42, %v968_v39  ;;  %v821_v39 = vld [vmem:[%s3693_s17 + $0x1f0] sm:$0xff] }
  0xeb   : > { %1911 = vmatpush.msrb.mxu1 %v821_v39 }
  0xec   : > { %2784 = vst [vmem:[%s3944_s28 + $0x300] sm:$0xff] %v1178_v43 }
  0xed   : > { %1018 = vmatmul.f32.gmra.mxu2 %v729_v44  ;;  %v875_v52 = vpop.f32.mrf.mxu0  ;;  %v1084_v53 = vpop.f32.mrf.mxu1  ;;  %v3983_v44 = vld [vmem:[%s3686_s24 + $0x130] sm:$0xff] }
  0xee   : > { %1227 = vmatmul.f32.gmra.mxu3 %v730_v45  ;;  %v1085_v60 = vadd.f32 %v1084_v53, %v875_v52  ;;  %v3986_v45 = vld [vmem:[%s3686_s24 + $0x138] sm:$0xff] }
  0xf0   : > { %v971_v61 = vpop.f32.mrf.mxu2  ;;  %2691 = vst [vmem:[%s3944_s28 + $0x18] sm:$0xff] %v1085_v60  ;;  %922 = vmatmul.f32.gmra.mxu0 %v3955_v58  ;;  %1131 = vmatmul.f32.gmra.mxu1 %v3958_v59  ;;  %v735_v60 = vld [vmem:[%s3686_s24 + $0x340] sm:$0xff] }
  0xf1   : > { %v1180_v0 = vpop.f32.mrf.mxu3 }
  0xf2   : > { %v1181_v1 = vadd.f32 %v1180_v0, %v971_v61  ;;  %v736_v61 = vld [vmem:[%s3686_s24 + $0x348] sm:$0xff]  ;;  %v3995_v0 = vld [vmem:[%s3686_s24 + $0x140] sm:$0xff] }
  0xf4   : > { %2787 = vst [vmem:[%s3944_s28 + $0x318] sm:$0xff] %v1181_v1 }
  0xf5   : > { %1021 = vmatmul.f32.gmra.mxu2 %v731_v6  ;;  %v878_v13 = vpop.f32.mrf.mxu0  ;;  %v1087_v16 = vpop.f32.mrf.mxu1 }
  0xf6   : > { %1230 = vmatmul.f32.gmra.mxu3 %v732_v7  ;;  %v1088_v24 = vadd.f32 %v1087_v16, %v878_v13  ;;  %v3998_v7 = vld [vmem:[%s3686_s24 + $0x148] sm:$0xff]  ;;  %v769_v13 = vld [vmem:[%s3693_s17 + $0x50] sm:$0xff] }
  0xf7   : > { %v817_v16 = vld [vmem:[%s3693_s17 + $0x1d0] sm:$0xff]  ;;  %1285 = vmatpush.msrb.mxu2 %v769_v13 }
  0xf8   : > { %v974_v25 = vpop.f32.mrf.mxu2  ;;  %2694 = vst [vmem:[%s3944_s28 + $0x30] sm:$0xff] %v1088_v24  ;;  %925 = vmatmul.f32.gmra.mxu0 %v3967_v12  ;;  %1134 = vmatmul.f32.gmra.mxu1 %v3970_v17 }
  0xf9   : > { %v1183_v29 = vpop.f32.mrf.mxu3  ;;  %1494 = vmatpush.msrb.mxu3 %v817_v16  ;;  %v4026_v16 = vld [vmem:[%s3686_s24 + $0x168] sm:$0xff] }
  0xfa   : > { %v1184_v30 = vadd.f32 %v1183_v29, %v974_v25  ;;  %v737_v29 = vld [vmem:[%s3686_s24 + $0x350] sm:$0xff] }
  0xfc   : > { %2790 = vst [vmem:[%s3944_s28 + $0x330] sm:$0xff] %v1184_v30  ;;  %v738_v30 = vld [vmem:[%s3686_s24 + $0x358] sm:$0xff] }
  0xfd   : > { %1024 = vmatmul.f32.gmra.mxu2 %v733_v32  ;;  %v881_v42 = vpop.f32.mrf.mxu0  ;;  %v1090_v43 = vpop.f32.mrf.mxu1  ;;  %v770_v32 = vld [vmem:[%s3693_s17 + $0x58] sm:$0xff] }
  0xfe   : > { %1233 = vmatmul.f32.gmra.mxu3 %v734_v33  ;;  %v1091_v46 = vadd.f32 %v1090_v43, %v881_v42  ;;  %v818_v33 = vld [vmem:[%s3693_s17 + $0x1d8] sm:$0xff]  ;;  %1703 = vmatpush.msrb.mxu0 %v770_v32  ;;  %v4011_v42 = vld [vmem:[%s3686_s24 + $0x150] sm:$0xff] }
  0xff   : > { %1912 = vmatpush.msrb.mxu1 %v818_v33  ;;  %v4014_v43 = vld [vmem:[%s3686_s24 + $0x158] sm:$0xff]  ;;  %v741_v32 = vld [vmem:[%s3686_s24 + $0x370] sm:$0xff] }
 0x100   : > { %v977_v47 = vpop.f32.mrf.mxu2  ;;  %2697 = vst [vmem:[%s3944_s28 + $0x48] sm:$0xff] %v1091_v46  ;;  %928 = vmatmul.f32.gmra.mxu0 %v3983_v44  ;;  %1137 = vmatmul.f32.gmra.mxu1 %v3986_v45  ;;  %v742_v33 = vld [vmem:[%s3686_s24 + $0x378] sm:$0xff] }
 0x101   : > { %v1186_v52 = vpop.f32.mrf.mxu3 }
 0x102   : > { %v1187_v53 = vadd.f32 %v1186_v52, %v977_v47 }
 0x104   : > { %2793 = vst [vmem:[%s3944_s28 + $0x348] sm:$0xff] %v1187_v53 }
 0x105   : > { %1027 = vmatmul.f32.gmra.mxu2 %v735_v60  ;;  %v884_v1 = vpop.f32.mrf.mxu0  ;;  %v1093_v6 = vpop.f32.mrf.mxu1  ;;  %v739_v60 = vld [vmem:[%s3686_s24 + $0x360] sm:$0xff] }
 0x106   : > { %1236 = vmatmul.f32.gmra.mxu3 %v736_v61  ;;  %v1094_v18 = vadd.f32 %v1093_v6, %v884_v1  ;;  %v740_v61 = vld [vmem:[%s3686_s24 + $0x368] sm:$0xff]  ;;  %v4023_v1 = vld [vmem:[%s3686_s24 + $0x160] sm:$0xff] }
 0x108   : > { %v980_v19 = vpop.f32.mrf.mxu2  ;;  %2700 = vst [vmem:[%s3944_s28 + $0x60] sm:$0xff] %v1094_v18  ;;  %931 = vmatmul.f32.gmra.mxu0 %v3995_v0  ;;  %1140 = vmatmul.f32.gmra.mxu1 %v3998_v7  ;;  %v766_v18 = vld [vmem:[%s3693_s17 + $0x38] sm:$0xff] }
 0x109   : > { %v1189_v24 = vpop.f32.mrf.mxu3  ;;  %1286 = vmatpush.msrb.mxu2 %v766_v18  ;;  %v743_v18 = vld [vmem:[%s3686_s24 + $0x380] sm:$0xff] }
 0x10a   : > { %v1190_v25 = vadd.f32 %v1189_v24, %v980_v19  ;;  %v814_v19 = vld [vmem:[%s3693_s17 + $0x1b8] sm:$0xff] }
 0x10b   : > { %1495 = vmatpush.msrb.mxu3 %v814_v19  ;;  %v744_v19 = vld [vmem:[%s3686_s24 + $0x388] sm:$0xff] }
 0x10c   : > { %2796 = vst [vmem:[%s3944_s28 + $0x360] sm:$0xff] %v1190_v25 }
 0x10d   : > { %1030 = vmatmul.f32.gmra.mxu2 %v737_v29  ;;  %v887_v38 = vpop.f32.mrf.mxu0  ;;  %v1096_v39 = vpop.f32.mrf.mxu1 }
 0x10e   : > { %1239 = vmatmul.f32.gmra.mxu3 %v738_v30  ;;  %v1097_v46 = vadd.f32 %v1096_v39, %v887_v38  ;;  %v767_v38 = vld [vmem:[%s3693_s17 + $0x40] sm:$0xff] }
 0x10f   : > { %v815_v39 = vld [vmem:[%s3693_s17 + $0x1c0] sm:$0xff]  ;;  %1704 = vmatpush.msrb.mxu0 %v767_v38 }
 0x110   : > { %v983_v47 = vpop.f32.mrf.mxu2  ;;  %2703 = vst [vmem:[%s3944_s28 + $0x78] sm:$0xff] %v1097_v46  ;;  %934 = vmatmul.f32.gmra.mxu0 %v4011_v42  ;;  %1143 = vmatmul.f32.gmra.mxu1 %v4014_v43 }
 0x111   : > { %v1192_v52 = vpop.f32.mrf.mxu3  ;;  %1913 = vmatpush.msrb.mxu1 %v815_v39 }
 0x112   : > { %v1193_v53 = vadd.f32 %v1192_v52, %v983_v47  ;;  %v4039_v52 = vld [vmem:[%s3686_s24 + $0x170] sm:$0xff] }
 0x114   : > { %2799 = vst [vmem:[%s3944_s28 + $0x378] sm:$0xff] %v1193_v53  ;;  %v4042_v53 = vld [vmem:[%s3686_s24 + $0x178] sm:$0xff] }
 0x115   : > { %1033 = vmatmul.f32.gmra.mxu2 %v739_v60  ;;  %v890_v6 = vpop.f32.mrf.mxu0  ;;  %v1099_v13 = vpop.f32.mrf.mxu1 }
 0x116   : > { %1242 = vmatmul.f32.gmra.mxu3 %v740_v61  ;;  %v1100_v24 = vadd.f32 %v1099_v13, %v890_v6 }
 0x118   : > { %v986_v25 = vpop.f32.mrf.mxu2  ;;  %2706 = vst [vmem:[%s3944_s28 + $0x90] sm:$0xff] %v1100_v24  ;;  %937 = vmatmul.f32.gmra.mxu0 %v4023_v1  ;;  %1146 = vmatmul.f32.gmra.mxu1 %v4026_v16  ;;  %v4051_v24 = vld [vmem:[%s3686_s24 + $0x180] sm:$0xff] }
 0x119   : > { %v1195_v29 = vpop.f32.mrf.mxu3 }
 0x11a   : > { %v1196_v30 = vadd.f32 %v1195_v29, %v986_v25 }
 0x11c   : > { %2802 = vst [vmem:[%s3944_s28 + $0x390] sm:$0xff] %v1196_v30  ;;  %v4054_v30 = vld [vmem:[%s3686_s24 + $0x188] sm:$0xff] }
 0x11d   : > { %1036 = vmatmul.f32.gmra.mxu2 %v741_v32  ;;  %v893_v46 = vpop.f32.mrf.mxu0  ;;  %v1102_v47 = vpop.f32.mrf.mxu1  ;;  %v763_v32 = vld [vmem:[%s3693_s17 + $0x20] sm:$0xff] }
 0x11e   : > { %1245 = vmatmul.f32.gmra.mxu3 %v742_v33  ;;  %v1103_v60 = vadd.f32 %v1102_v47, %v893_v46  ;;  %v811_v33 = vld [vmem:[%s3693_s17 + $0x1a0] sm:$0xff]  ;;  %1287 = vmatpush.msrb.mxu2 %v763_v32 }
 0x11f   : > { %1496 = vmatpush.msrb.mxu3 %v811_v33 }
 0x120   : > { %v989_v61 = vpop.f32.mrf.mxu2  ;;  %2709 = vst [vmem:[%s3944_s28 + $0xa8] sm:$0xff] %v1103_v60  ;;  %940 = vmatmul.f32.gmra.mxu0 %v4039_v52  ;;  %1149 = vmatmul.f32.gmra.mxu1 %v4042_v53  ;;  %v745_v60 = vld [vmem:[%s3686_s24 + $0x390] sm:$0xff] }
 0x121   : > { %v1198_v6 = vpop.f32.mrf.mxu3 }
 0x122   : > { %v1199_v13 = vadd.f32 %v1198_v6, %v989_v61  ;;  %v746_v61 = vld [vmem:[%s3686_s24 + $0x398] sm:$0xff]  ;;  %v764_v6 = vld [vmem:[%s3693_s17 + $0x28] sm:$0xff] }
 0x123   : > { %1705 = vmatpush.msrb.mxu0 %v764_v6 }
 0x124   : > { %2805 = vst [vmem:[%s3944_s28 + $0x3a8] sm:$0xff] %v1199_v13  ;;  %v812_v13 = vld [vmem:[%s3693_s17 + $0x1a8] sm:$0xff] }
 0x125   : > { %1039 = vmatmul.f32.gmra.mxu2 %v743_v18  ;;  %v896_v25 = vpop.f32.mrf.mxu0  ;;  %v1105_v29 = vpop.f32.mrf.mxu1  ;;  %1914 = vmatpush.msrb.mxu1 %v812_v13  ;;  %v4082_v13 = vld [vmem:[%s3686_s24 + $0x1a8] sm:$0xff] }
 0x126   : > { %1248 = vmatmul.f32.gmra.mxu3 %v744_v19  ;;  %v1106_v38 = vadd.f32 %v1105_v29, %v896_v25  ;;  %v4067_v25 = vld [vmem:[%s3686_s24 + $0x190] sm:$0xff]  ;;  %v4070_v29 = vld [vmem:[%s3686_s24 + $0x198] sm:$0xff]  ;;  %4626 = vst [vmem:[#allocation22_spill] sm:$0xff] %v4082_v13 }
 0x127   : > { %4624 = vst [vmem:[#allocation20_spill] sm:$0xff] %v4067_v25 }
 0x128   : > { %v992_v39 = vpop.f32.mrf.mxu2  ;;  %2712 = vst [vmem:[%s3944_s28 + $0xc0] sm:$0xff] %v1106_v38  ;;  %943 = vmatmul.f32.gmra.mxu0 %v4051_v24  ;;  %1152 = vmatmul.f32.gmra.mxu1 %v4054_v30 }
 0x129   : > { %v1201_v46 = vpop.f32.mrf.mxu3  ;;  %4625 = vst [vmem:[#allocation21_spill] sm:$0xff] %v4070_v29 }
 0x12a   : > { %v1202_v47 = vadd.f32 %v1201_v46, %v992_v39  ;;  %v747_v46 = vld [vmem:[%s3686_s24 + $0x3a0] sm:$0xff] }
 0x12c   : > { %2808 = vst [vmem:[%s3944_s28 + $0x3c0] sm:$0xff] %v1202_v47  ;;  %v748_v47 = vld [vmem:[%s3686_s24 + $0x3a8] sm:$0xff] }
 0x12d   : > { %1042 = vmatmul.f32.gmra.mxu2 %v745_v60  ;;  %v899_v18 = vpop.f32.mrf.mxu0  ;;  %v1108_v19 = vpop.f32.mrf.mxu1  ;;  %v4079_v60 = vld [vmem:[%s3686_s24 + $0x1a0] sm:$0xff] }
 0x12e   : > { %1251 = vmatmul.f32.gmra.mxu3 %v746_v61  ;;  %v1109_v32 = vadd.f32 %v1108_v19, %v899_v18  ;;  %v760_v18 = vld [vmem:[%s3693_s17 + $0x8] sm:$0xff] }
 0x12f   : > { %v808_v19 = vld [vmem:[%s3693_s17 + $0x188] sm:$0xff]  ;;  %1288 = vmatpush.msrb.mxu2 %v760_v18  ;;  %v4095_v18 = vld [vmem:[%s3686_s24 + $0x1b0] sm:$0xff] }
 0x130   : > { %v995_v33 = vpop.f32.mrf.mxu2  ;;  %2715 = vst [vmem:[%s3944_s28 + $0xd8] sm:$0xff] %v1109_v32  ;;  %946 = vmatmul.f32.gmra.mxu0 %v4067_v25  ;;  %1155 = vmatmul.f32.gmra.mxu1 %v4070_v29  ;;  %v761_v29 = vld [vmem:[%s3693_s17 + $0x10] sm:$0xff] }
 0x131   : > { %v1204_v38 = vpop.f32.mrf.mxu3  ;;  %1497 = vmatpush.msrb.mxu3 %v808_v19  ;;  %v809_v25 = vld [vmem:[%s3693_s17 + $0x190] sm:$0xff]  ;;  %1706 = vmatpush.msrb.mxu0 %v761_v29  ;;  %4627 = vst [vmem:[#allocation23_spill] sm:$0xff] %v4095_v18  ;;  %v4098_v19 = vld [vmem:[%s3686_s24 + $0x1b8] sm:$0xff]  ;;  %v751_v29 = vld [vmem:[%s3686_s24 + $0x3c0] sm:$0xff]  ;;  %s3358_s17 = scalar_lea.hbm %s4647_s26, 6144 }
 0x132   : > { %v1205_v39 = vadd.f32 %v1204_v38, %v995_v33  ;;  %1915 = vmatpush.msrb.mxu1 %v809_v25  ;;  %4628 = vst [vmem:[#allocation24_spill] sm:$0xff] %v4098_v19 }
 0x134   : > { %2811 = vst [vmem:[%s3944_s28 + $0x3d8] sm:$0xff] %v1205_v39 }
 0x135   : > { %1045 = vmatmul.f32.gmra.mxu2 %v747_v46  ;;  %v902_v61 = vpop.f32.mrf.mxu0  ;;  %v1111_v6 = vpop.f32.mrf.mxu1  ;;  %v749_v46 = vld [vmem:[%s3686_s24 + $0x3b0] sm:$0xff] }
 0x136   : > { %1254 = vmatmul.f32.gmra.mxu3 %v748_v47  ;;  %v1112_v32 = vadd.f32 %v1111_v6, %v902_v61  ;;  %v750_v47 = vld [vmem:[%s3686_s24 + $0x3b8] sm:$0xff] }
 0x138   : > { %v998_v33 = vpop.f32.mrf.mxu2  ;;  %2718 = vst [vmem:[%s3944_s28 + $0xf0] sm:$0xff] %v1112_v32  ;;  %949 = vmatmul.f32.gmra.mxu0 %v4079_v60  ;;  %1158 = vmatmul.f32.gmra.mxu1 %v4082_v13  ;;  %v4143_v13 = vld [vmem:[%s3686_s24 + $0x1f0] sm:$0xff] }
 0x139   : > { %v1207_v38 = vpop.f32.mrf.mxu3 }
 0x13a   : > { %v1208_v39 = vadd.f32 %v1207_v38, %v998_v33 }
 0x13c   : > { %2814 = vst [vmem:[%s3944_s28 + $0x3f0] sm:$0xff] %v1208_v39  ;;  %v752_v39 = vld [vmem:[%s3686_s24 + $0x3c8] sm:$0xff] }
 0x13d   : > { %1048 = vmatmul.f32.gmra.mxu2 %v749_v46  ;;  %v905_v61 = vpop.f32.mrf.mxu0  ;;  %v1114_v6 = vpop.f32.mrf.mxu1 }
 0x13e   : > { %1257 = vmatmul.f32.gmra.mxu3 %v750_v47  ;;  %v1115_v32 = vadd.f32 %v1114_v6, %v905_v61  ;;  %v4107_v61 = vld [vmem:[%s3686_s24 + $0x1c0] sm:$0xff]  ;;  %v4110_v6 = vld [vmem:[%s3686_s24 + $0x1c8] sm:$0xff] }
 0x13f   : > { %4629 = vst [vmem:[#allocation25_spill] sm:$0xff] %v4107_v61 }
 0x140   : > { %v1001_v33 = vpop.f32.mrf.mxu2  ;;  %2721 = vst [vmem:[%s3944_s28 + $0x108] sm:$0xff] %v1115_v32  ;;  %952 = vmatmul.f32.gmra.mxu0 %v4095_v18  ;;  %1161 = vmatmul.f32.gmra.mxu1 %v4098_v19 }
 0x141   : > { %v1210_v38 = vpop.f32.mrf.mxu3  ;;  %4630 = vst [vmem:[#allocation26_spill] sm:$0xff] %v4110_v6 }
 0x142   : > { %v1211_v25 = vadd.f32 %v1210_v38, %v1001_v33 }
 0x144   : > { %2817 = vst [vmem:[%s3944_s28 + $0x408] sm:$0xff] %v1211_v25  ;;  %v753_v25 = vld [vmem:[%s3686_s24 + $0x3d0] sm:$0xff] }
 0x145   : > { %1051 = vmatmul.f32.gmra.mxu2 %v751_v29  ;;  %v908_v46 = vpop.f32.mrf.mxu0  ;;  %v1117_v47 = vpop.f32.mrf.mxu1  ;;  %v754_v29 = vld [vmem:[%s3686_s24 + $0x3d8] sm:$0xff] }
 0x146   : > { %1260 = vmatmul.f32.gmra.mxu3 %v752_v39  ;;  %v1118_v32 = vadd.f32 %v1117_v47, %v908_v46  ;;  %v4119_v46 = vld [vmem:[%s3686_s24 + $0x1d0] sm:$0xff]  ;;  %v4122_v47 = vld [vmem:[%s3686_s24 + $0x1d8] sm:$0xff] }
 0x147   : > { %4631 = vst [vmem:[#allocation27_spill] sm:$0xff] %v4119_v46 }
 0x148   : > { %v1004_v18 = vpop.f32.mrf.mxu2  ;;  %2724 = vst [vmem:[%s3944_s28 + $0x120] sm:$0xff] %v1118_v32  ;;  %955 = vmatmul.f32.gmra.mxu0 %v4107_v61  ;;  %1164 = vmatmul.f32.gmra.mxu1 %v4110_v6 }
 0x149   : > { %v1213_v33 = vpop.f32.mrf.mxu3  ;;  %4632 = vst [vmem:[#allocation28_spill] sm:$0xff] %v4122_v47 }
 0x14a   : > { %v1214_v38 = vadd.f32 %v1213_v33, %v1004_v18 }
 0x14c   : > { %2820 = vst [vmem:[%s3944_s28 + $0x420] sm:$0xff] %v1214_v38  ;;  %v755_v38 = vld [vmem:[%s3686_s24 + $0x3e0] sm:$0xff] }
 0x14d   : > { %1054 = vmatmul.f32.gmra.mxu2 %v753_v25  ;;  %v911_v39 = vpop.f32.mrf.mxu0  ;;  %v1120_v19 = vpop.f32.mrf.mxu1  ;;  %v756_v25 = vld [vmem:[%s3686_s24 + $0x3e8] sm:$0xff] }
 0x14e   : > { %1263 = vmatmul.f32.gmra.mxu3 %v754_v29  ;;  %v1121_v32 = vadd.f32 %v1120_v19, %v911_v39  ;;  %v4131_v19 = vld [vmem:[%s3686_s24 + $0x1e0] sm:$0xff]  ;;  %v4134_v39 = vld [vmem:[%s3686_s24 + $0x1e8] sm:$0xff] }
 0x14f   : > { %4633 = vst [vmem:[#allocation29_spill] sm:$0xff] %v4134_v39 }
 0x150   : > { %v1007_v61 = vpop.f32.mrf.mxu2  ;;  %2727 = vst [vmem:[%s3944_s28 + $0x138] sm:$0xff] %v1121_v32  ;;  %958 = vmatmul.f32.gmra.mxu0 %v4119_v46  ;;  %1167 = vmatmul.f32.gmra.mxu1 %v4122_v47 }
 0x151   : > { %v1216_v18 = vpop.f32.mrf.mxu3 }
 0x152   : > { %v1217_v33 = vadd.f32 %v1216_v18, %v1007_v61 }
 0x154   : > { %2823 = vst [vmem:[%s3944_s28 + $0x438] sm:$0xff] %v1217_v33  ;;  %v757_v33 = vld [vmem:[%s3686_s24 + $0x3f0] sm:$0xff] }
 0x155   : > { %1057 = vmatmul.f32.gmra.mxu2 %v755_v38  ;;  %v914_v29 = vpop.f32.mrf.mxu0  ;;  %v1123_v6 = vpop.f32.mrf.mxu1  ;;  %v758_v38 = vld [vmem:[%s3686_s24 + $0x3f8] sm:$0xff] }
 0x156   : > { %1266 = vmatmul.f32.gmra.mxu3 %v756_v25  ;;  %v1124_v32 = vadd.f32 %v1123_v6, %v914_v29  ;;  %v4146_v6 = vld [vmem:[%s3686_s24 + $0x1f8] sm:$0xff] }
 0x157   : > { %4634 = vst [vmem:[#allocation30_spill] sm:$0xff] %v4146_v6 }
 0x158   : > { %v1010_v46 = vpop.f32.mrf.mxu2  ;;  %2730 = vst [vmem:[%s3944_s28 + $0x150] sm:$0xff] %v1124_v32  ;;  %961 = vmatmul.f32.gmra.mxu0 %v4131_v19  ;;  %1170 = vmatmul.f32.gmra.mxu1 %v4134_v39 }
 0x159   : > { %v1219_v61 = vpop.f32.mrf.mxu3 }
 0x15a   : > { %v1220_v18 = vadd.f32 %v1219_v61, %v1010_v46 }
 0x15c   : > { %2826 = vst [vmem:[%s3944_s28 + $0x450] sm:$0xff] %v1220_v18 }
 0x15d   : > { %1060 = vmatmul.f32.gmra.mxu2 %v757_v33  ;;  %v917_v25 = vpop.f32.mrf.mxu0  ;;  %v1126_v47 = vpop.f32.mrf.mxu1 }
 0x15e   : > { %1269 = vmatmul.f32.gmra.mxu3 %v758_v38  ;;  %v1127_v29 = vadd.f32 %v1126_v47, %v917_v25  ;;  %v3212_v25 = vld [vmem:[%s3686_s24] sm:$0xff] }
 0x160   : > { %v1013_v32 = vpop.f32.mrf.mxu2  ;;  %2733 = vst [vmem:[%s3944_s28 + $0x168] sm:$0xff] %v1127_v29  ;;  %964 = vmatmul.f32.gmra.mxu0 %v4143_v13  ;;  %1173 = vmatmul.f32.gmra.mxu1 %v4146_v6  ;;  %v3213_v29 = vld [vmem:[%s3686_s24 + $0x8] sm:$0xff] }
 0x161   : > { %v1222_v39 = vpop.f32.mrf.mxu3 }
 0x162   : > { %v1223_v46 = vadd.f32 %v1222_v39, %v1013_v32 }
 0x164   : > { %2829 = vst [vmem:[%s3944_s28 + $0x468] sm:$0xff] %v1223_v46 }
 0x165   : > { %1289 = vmatmul.f32.vlgmr.msrb.gmra.mxu2 %v3736_v36  ;;  %v920_v61 = vpop.f32.mrf.mxu0  ;;  %v1129_v18 = vpop.f32.mrf.mxu1 }
 0x166   : > { %1498 = vmatmul.f32.vlgmr.msrb.gmra.mxu3 %v3739_v37  ;;  %v1130_v33 = vadd.f32 %v1129_v18, %v920_v61 }
 0x168   : > { %v1016_v47 = vpop.f32.mrf.mxu2  ;;  %2736 = vst [vmem:[%s3944_s28 + $0x180] sm:$0xff] %v1130_v33  ;;  %1707 = vmatmul.f32.vlgmr.msrb.gmra.mxu0 %v3212_v25  ;;  %1916 = vmatmul.f32.vlgmr.msrb.gmra.mxu1 %v3213_v29 }
 0x169   : > { %v1225_v38 = vpop.f32.mrf.mxu3 }
 0x16a   : > { %v1226_v6 = vadd.f32 %v1225_v38, %v1016_v47 }
 0x16c   : > { %2832 = vst [vmem:[%s3944_s28 + $0x480] sm:$0xff] %v1226_v6 }
 0x16d   : > { %1292 = vmatmul.f32.gmra.mxu2 %v3756_v50  ;;  %v923_v36 = vpop.f32.mrf.mxu0  ;;  %v1132_v37 = vpop.f32.mrf.mxu1 }
 0x16e   : > { %1501 = vmatmul.f32.gmra.mxu3 %v3759_v51  ;;  %v1133_v39 = vadd.f32 %v1132_v37, %v923_v36 }
 0x170   : > { %v1019_v32 = vpop.f32.mrf.mxu2  ;;  %2739 = vst [vmem:[%s3944_s28 + $0x198] sm:$0xff] %v1133_v39  ;;  %1710 = vmatmul.f32.gmra.mxu0 %v3756_v50  ;;  %1919 = vmatmul.f32.gmra.mxu1 %v3759_v51 }
 0x171   : > { %v1228_v46 = vpop.f32.mrf.mxu3 }
 0x172   : > { %v1229_v61 = vadd.f32 %v1228_v46, %v1019_v32 }
 0x174   : > { %2835 = vst [vmem:[%s3944_s28 + $0x498] sm:$0xff] %v1229_v61 }
 0x175   : > { %1295 = vmatmul.f32.gmra.mxu2 %v3766_v54  ;;  %v926_v6 = vpop.f32.mrf.mxu0  ;;  %v1135_v18 = vpop.f32.mrf.mxu1 }
 0x176   : > { %1504 = vmatmul.f32.gmra.mxu3 %v3769_v55  ;;  %v1136_v33 = vadd.f32 %v1135_v18, %v926_v6 }
 0x178   : > { %v1022_v47 = vpop.f32.mrf.mxu2  ;;  %2742 = vst [vmem:[%s3944_s28 + $0x1b0] sm:$0xff] %v1136_v33  ;;  %1713 = vmatmul.f32.gmra.mxu0 %v3766_v54  ;;  %1922 = vmatmul.f32.gmra.mxu1 %v3769_v55 }
 0x179   : > { %v1231_v38 = vpop.f32.mrf.mxu3 }
 0x17a   : > { %v1232_v50 = vadd.f32 %v1231_v38, %v1022_v47 }
 0x17c   : > { %2838 = vst [vmem:[%s3944_s28 + $0x4b0] sm:$0xff] %v1232_v50 }
 0x17d   : > { %1298 = vmatmul.f32.gmra.mxu2 %v3780_v62  ;;  %v929_v51 = vpop.f32.mrf.mxu0  ;;  %v1138_v25 = vpop.f32.mrf.mxu1 }
 0x17e   : > { %1507 = vmatmul.f32.gmra.mxu3 %v3783_v63  ;;  %v1139_v29 = vadd.f32 %v1138_v25, %v929_v51 }
 0x180   : > { %v1025_v36 = vpop.f32.mrf.mxu2  ;;  %2745 = vst [vmem:[%s3944_s28 + $0x1c8] sm:$0xff] %v1139_v29  ;;  %1716 = vmatmul.f32.gmra.mxu0 %v3780_v62  ;;  %1925 = vmatmul.f32.gmra.mxu1 %v3783_v63 }
 0x181   : > { %v1234_v37 = vpop.f32.mrf.mxu3 }
 0x182   : > { %v1235_v54 = vadd.f32 %v1234_v37, %v1025_v36 }
 0x184   : > { %2841 = vst [vmem:[%s3944_s28 + $0x4c8] sm:$0xff] %v1235_v54 }
 0x185   : > { %1301 = vmatmul.f32.gmra.mxu2 %v3790_v2  ;;  %v932_v55 = vpop.f32.mrf.mxu0  ;;  %v1141_v39 = vpop.f32.mrf.mxu1 }
 0x186   : > { %1510 = vmatmul.f32.gmra.mxu3 %v3793_v3  ;;  %v1142_v32 = vadd.f32 %v1141_v39, %v932_v55 }
 0x188   : > { %v1028_v46 = vpop.f32.mrf.mxu2  ;;  %2748 = vst [vmem:[%s3944_s28 + $0x1e0] sm:$0xff] %v1142_v32  ;;  %1719 = vmatmul.f32.gmra.mxu0 %v3790_v2  ;;  %1928 = vmatmul.f32.gmra.mxu1 %v3793_v3 }
 0x189   : > { %v1237_v61 = vpop.f32.mrf.mxu3 }
 0x18a   : > { %v1238_v62 = vadd.f32 %v1237_v61, %v1028_v46 }
 0x18c   : > { %2844 = vst [vmem:[%s3944_s28 + $0x4e0] sm:$0xff] %v1238_v62 }
 0x18d   : > { %1304 = vmatmul.f32.gmra.mxu2 %v3804_v10  ;;  %v935_v63 = vpop.f32.mrf.mxu0  ;;  %v1144_v6 = vpop.f32.mrf.mxu1 }
 0x18e   : > { %1513 = vmatmul.f32.gmra.mxu3 %v3807_v11  ;;  %v1145_v18 = vadd.f32 %v1144_v6, %v935_v63 }
 0x190   : > { %v1031_v33 = vpop.f32.mrf.mxu2  ;;  %2751 = vst [vmem:[%s3944_s28 + $0x1f8] sm:$0xff] %v1145_v18  ;;  %1722 = vmatmul.f32.gmra.mxu0 %v3804_v10  ;;  %1931 = vmatmul.f32.gmra.mxu1 %v3807_v11 }
 0x191   : > { %v1240_v47 = vpop.f32.mrf.mxu3 }
 0x192   : > { %v1241_v2 = vadd.f32 %v1240_v47, %v1031_v33 }
 0x194   : > { %2847 = vst [vmem:[%s3944_s28 + $0x4f8] sm:$0xff] %v1241_v2 }
 0x195   : > { %1307 = vmatmul.f32.gmra.mxu2 %v3814_v14  ;;  %v938_v3 = vpop.f32.mrf.mxu0  ;;  %v1147_v38 = vpop.f32.mrf.mxu1 }
 0x196   : > { %1516 = vmatmul.f32.gmra.mxu3 %v3817_v15  ;;  %v1148_v50 = vadd.f32 %v1147_v38, %v938_v3 }
 0x198   : > { %v1034_v51 = vpop.f32.mrf.mxu2  ;;  %2754 = vst [vmem:[%s3944_s28 + $0x210] sm:$0xff] %v1148_v50  ;;  %1725 = vmatmul.f32.gmra.mxu0 %v3814_v14  ;;  %1934 = vmatmul.f32.gmra.mxu1 %v3817_v15 }
 0x199   : > { %v1243_v25 = vpop.f32.mrf.mxu3 }
 0x19a   : > { %v1244_v10 = vadd.f32 %v1243_v25, %v1034_v51 }
 0x19c   : > { %2850 = vst [vmem:[%s3944_s28 + $0x510] sm:$0xff] %v1244_v10 }
 0x19d   : > { %1310 = vmatmul.f32.gmra.mxu2 %v3828_v22  ;;  %v941_v11 = vpop.f32.mrf.mxu0  ;;  %v1150_v29 = vpop.f32.mrf.mxu1 }
 0x19e   : > { %1519 = vmatmul.f32.gmra.mxu3 %v3831_v23  ;;  %v1151_v36 = vadd.f32 %v1150_v29, %v941_v11 }
 0x1a0   : > { %v1037_v37 = vpop.f32.mrf.mxu2  ;;  %2757 = vst [vmem:[%s3944_s28 + $0x228] sm:$0xff] %v1151_v36  ;;  %1728 = vmatmul.f32.gmra.mxu0 %v3828_v22  ;;  %1937 = vmatmul.f32.gmra.mxu1 %v3831_v23 }
 0x1a1   : > { %v1246_v54 = vpop.f32.mrf.mxu3 }
 0x1a2   : > { %v1247_v14 = vadd.f32 %v1246_v54, %v1037_v37 }
 0x1a4   : > { %2853 = vst [vmem:[%s3944_s28 + $0x528] sm:$0xff] %v1247_v14 }
 0x1a5   : > { %1313 = vmatmul.f32.gmra.mxu2 %v3838_v26  ;;  %v944_v15 = vpop.f32.mrf.mxu0  ;;  %v1153_v55 = vpop.f32.mrf.mxu1 }
 0x1a6   : > { %1522 = vmatmul.f32.gmra.mxu3 %v3841_v27  ;;  %v1154_v39 = vadd.f32 %v1153_v55, %v944_v15 }
 0x1a8   : > { %v1040_v32 = vpop.f32.mrf.mxu2  ;;  %2760 = vst [vmem:[%s3944_s28 + $0x240] sm:$0xff] %v1154_v39  ;;  %1731 = vmatmul.f32.gmra.mxu0 %v3838_v26  ;;  %1940 = vmatmul.f32.gmra.mxu1 %v3841_v27 }
 0x1a9   : > { %v1249_v46 = vpop.f32.mrf.mxu3 }
 0x1aa   : > { %v1250_v22 = vadd.f32 %v1249_v46, %v1040_v32 }
 0x1ac   : > { %2856 = vst [vmem:[%s3944_s28 + $0x540] sm:$0xff] %v1250_v22 }
 0x1ad   : > { %1316 = vmatmul.f32.gmra.mxu2 %v3852_v34  ;;  %v947_v23 = vpop.f32.mrf.mxu0  ;;  %v1156_v61 = vpop.f32.mrf.mxu1 }
 0x1ae   : > { %1525 = vmatmul.f32.gmra.mxu3 %v3855_v35  ;;  %v1157_v62 = vadd.f32 %v1156_v61, %v947_v23 }
 0x1b0   : > { %v1043_v63 = vpop.f32.mrf.mxu2  ;;  %2763 = vst [vmem:[%s3944_s28 + $0x258] sm:$0xff] %v1157_v62  ;;  %1734 = vmatmul.f32.gmra.mxu0 %v3852_v34  ;;  %1943 = vmatmul.f32.gmra.mxu1 %v3855_v35 }
 0x1b1   : > { %v1252_v6 = vpop.f32.mrf.mxu3 }
 0x1b2   : > { %v1253_v26 = vadd.f32 %v1252_v6, %v1043_v63 }
 0x1b4   : > { %2859 = vst [vmem:[%s3944_s28 + $0x558] sm:$0xff] %v1253_v26 }
 0x1b5   : > { %1319 = vmatmul.f32.gmra.mxu2 %v3862_v40  ;;  %v950_v27 = vpop.f32.mrf.mxu0  ;;  %v1159_v18 = vpop.f32.mrf.mxu1 }
 0x1b6   : > { %1528 = vmatmul.f32.gmra.mxu3 %v3865_v41  ;;  %v1160_v33 = vadd.f32 %v1159_v18, %v950_v27 }
 0x1b8   : > { %v1046_v47 = vpop.f32.mrf.mxu2  ;;  %2766 = vst [vmem:[%s3944_s28 + $0x270] sm:$0xff] %v1160_v33  ;;  %1737 = vmatmul.f32.gmra.mxu0 %v3862_v40  ;;  %1946 = vmatmul.f32.gmra.mxu1 %v3865_v41 }
 0x1b9   : > { %v1255_v2 = vpop.f32.mrf.mxu3 }
 0x1ba   : > { %v1256_v34 = vadd.f32 %v1255_v2, %v1046_v47 }
 0x1bc   : > { %2862 = vst [vmem:[%s3944_s28 + $0x570] sm:$0xff] %v1256_v34 }
 0x1bd   : > { %1322 = vmatmul.f32.gmra.mxu2 %v3876_v48  ;;  %v953_v35 = vpop.f32.mrf.mxu0  ;;  %v1162_v3 = vpop.f32.mrf.mxu1 }
 0x1be   : > { %1531 = vmatmul.f32.gmra.mxu3 %v3879_v49  ;;  %v1163_v38 = vadd.f32 %v1162_v3, %v953_v35 }
 0x1c0   : > { %v1049_v50 = vpop.f32.mrf.mxu2  ;;  %2769 = vst [vmem:[%s3944_s28 + $0x288] sm:$0xff] %v1163_v38  ;;  %1740 = vmatmul.f32.gmra.mxu0 %v3876_v48  ;;  %1949 = vmatmul.f32.gmra.mxu1 %v3879_v49 }
 0x1c1   : > { %v1258_v51 = vpop.f32.mrf.mxu3 }
 0x1c2   : > { %v1259_v40 = vadd.f32 %v1258_v51, %v1049_v50 }
 0x1c4   : > { %2865 = vst [vmem:[%s3944_s28 + $0x588] sm:$0xff] %v1259_v40 }
 0x1c5   : > { %1325 = vmatmul.f32.gmra.mxu2 %v3886_v56  ;;  %v956_v41 = vpop.f32.mrf.mxu0  ;;  %v1165_v25 = vpop.f32.mrf.mxu1 }
 0x1c6   : > { %1534 = vmatmul.f32.gmra.mxu3 %v3889_v57  ;;  %v1166_v10 = vadd.f32 %v1165_v25, %v956_v41 }
 0x1c8   : > { %v1052_v11 = vpop.f32.mrf.mxu2  ;;  %2772 = vst [vmem:[%s3944_s28 + $0x2a0] sm:$0xff] %v1166_v10  ;;  %1743 = vmatmul.f32.gmra.mxu0 %v3886_v56  ;;  %1952 = vmatmul.f32.gmra.mxu1 %v3889_v57 }
 0x1c9   : > { %v1261_v29 = vpop.f32.mrf.mxu3 }
 0x1ca   : > { %v1262_v48 = vadd.f32 %v1261_v29, %v1052_v11 }
 0x1cc   : > { %2868 = vst [vmem:[%s3944_s28 + $0x5a0] sm:$0xff] %v1262_v48 }
 0x1cd   : > { %1328 = vmatmul.f32.gmra.mxu2 %v3900_v4  ;;  %v959_v49 = vpop.f32.mrf.mxu0  ;;  %v1168_v36 = vpop.f32.mrf.mxu1 }
 0x1ce   : > { %1537 = vmatmul.f32.gmra.mxu3 %v3903_v5  ;;  %v1169_v37 = vadd.f32 %v1168_v36, %v959_v49 }
 0x1d0   : > { %v1055_v54 = vpop.f32.mrf.mxu2  ;;  %2775 = vst [vmem:[%s3944_s28 + $0x2b8] sm:$0xff] %v1169_v37  ;;  %1746 = vmatmul.f32.gmra.mxu0 %v3900_v4  ;;  %1955 = vmatmul.f32.gmra.mxu1 %v3903_v5 }
 0x1d1   : > { %v1264_v14 = vpop.f32.mrf.mxu3 }
 0x1d2   : > { %v1265_v56 = vadd.f32 %v1264_v14, %v1055_v54 }
 0x1d4   : > { %2871 = vst [vmem:[%s3944_s28 + $0x5b8] sm:$0xff] %v1265_v56 }
 0x1d5   : > { %1331 = vmatmul.f32.gmra.mxu2 %v3910_v8  ;;  %v962_v57 = vpop.f32.mrf.mxu0  ;;  %v1171_v15 = vpop.f32.mrf.mxu1 }
 0x1d6   : > { %1540 = vmatmul.f32.gmra.mxu3 %v3913_v9  ;;  %v1172_v55 = vadd.f32 %v1171_v15, %v962_v57 }
 0x1d8   : > { %v1058_v39 = vpop.f32.mrf.mxu2  ;;  %2778 = vst [vmem:[%s3944_s28 + $0x2d0] sm:$0xff] %v1172_v55  ;;  %1749 = vmatmul.f32.gmra.mxu0 %v3910_v8  ;;  %1958 = vmatmul.f32.gmra.mxu1 %v3913_v9 }
 0x1d9   : > { %v1267_v32 = vpop.f32.mrf.mxu3 }
 0x1da   : > { %v1268_v4 = vadd.f32 %v1267_v32, %v1058_v39 }
 0x1dc   : > { %2874 = vst [vmem:[%s3944_s28 + $0x5d0] sm:$0xff] %v1268_v4 }
 0x1dd   : > { %1334 = vmatmul.f32.gmra.mxu2 %v3924_v20  ;;  %v965_v5 = vpop.f32.mrf.mxu0  ;;  %v1174_v46 = vpop.f32.mrf.mxu1 }
 0x1de   : > { %1543 = vmatmul.f32.gmra.mxu3 %v3927_v21  ;;  %v1175_v22 = vadd.f32 %v1174_v46, %v965_v5 }
 0x1e0   : > { %v1061_v23 = vpop.f32.mrf.mxu2  ;;  %2781 = vst [vmem:[%s3944_s28 + $0x2e8] sm:$0xff] %v1175_v22  ;;  %1752 = vmatmul.f32.gmra.mxu0 %v3924_v20  ;;  %1961 = vmatmul.f32.gmra.mxu1 %v3927_v21  ;;  %v4636_v22 = vld [vmem:[#allocation21_spill] sm:$0xff] }
 0x1e1   : > { %v1270_v61 = vpop.f32.mrf.mxu3 }
 0x1e2   : > { %v1271_v8 = vadd.f32 %v1270_v61, %v1061_v23 }
 0x1e4   : > { %2877 = vst [vmem:[%s3944_s28 + $0x5e8] sm:$0xff] %v1271_v8 }
 0x1e5   : > { %1337 = vmatmul.f32.gmra.mxu2 %v3937_v28  ;;  %v1708_v9 = vpop.f32.mrf.mxu0  ;;  %v1917_v62 = vpop.f32.mrf.mxu1 }
 0x1e6   : > { %1546 = vmatmul.f32.gmra.mxu3 %v3940_v31  ;;  %v1918_v63 = vadd.f32 %v1917_v62, %v1708_v9 }
 0x1e8   : > { %v1290_v6 = vpop.f32.mrf.mxu2  ;;  %2690 = vst [vmem:[%s3944_s28 + $0x10] sm:$0xff] %v1918_v63  ;;  %1755 = vmatmul.f32.gmra.mxu0 %v3937_v28  ;;  %1964 = vmatmul.f32.gmra.mxu1 %v3940_v31 }
 0x1e9   : > { %v1499_v26 = vpop.f32.mrf.mxu3 }
 0x1ea   : > { %v1500_v20 = vadd.f32 %v1499_v26, %v1290_v6 }
 0x1ec   : > { %2689 = vst [vmem:[%s3944_s28 + $0x8] sm:$0xff] %v1500_v20 }
 0x1ed   : > { %1340 = vmatmul.f32.gmra.mxu2 %v3955_v58  ;;  %v1711_v21 = vpop.f32.mrf.mxu0  ;;  %v1920_v27 = vpop.f32.mrf.mxu1 }
 0x1ee   : > { %1549 = vmatmul.f32.gmra.mxu3 %v3958_v59  ;;  %v1921_v18 = vadd.f32 %v1920_v27, %v1711_v21 }
 0x1f0   : > { %v1293_v33 = vpop.f32.mrf.mxu2  ;;  %2693 = vst [vmem:[%s3944_s28 + $0x28] sm:$0xff] %v1921_v18  ;;  %1758 = vmatmul.f32.gmra.mxu0 %v3955_v58  ;;  %1967 = vmatmul.f32.gmra.mxu1 %v3958_v59  ;;  %v4638_v18 = vld [vmem:[#allocation23_spill] sm:$0xff] }
 0x1f1   : > { %v1502_v47 = vpop.f32.mrf.mxu3 }
 0x1f2   : > { %v1503_v28 = vadd.f32 %v1502_v47, %v1293_v33  ;;  %v4639_v33 = vld [vmem:[#allocation24_spill] sm:$0xff] }
 0x1f4   : > { %2692 = vst [vmem:[%s3944_s28 + $0x20] sm:$0xff] %v1503_v28 }
 0x1f5   : > { %1343 = vmatmul.f32.gmra.mxu2 %v3967_v12  ;;  %v1714_v31 = vpop.f32.mrf.mxu0  ;;  %v1923_v2 = vpop.f32.mrf.mxu1 }
 0x1f6   : > { %1552 = vmatmul.f32.gmra.mxu3 %v3970_v17  ;;  %v1924_v34 = vadd.f32 %v1923_v2, %v1714_v31 }
 0x1f8   : > { %v1296_v35 = vpop.f32.mrf.mxu2  ;;  %2696 = vst [vmem:[%s3944_s28 + $0x40] sm:$0xff] %v1924_v34  ;;  %1761 = vmatmul.f32.gmra.mxu0 %v3967_v12  ;;  %1970 = vmatmul.f32.gmra.mxu1 %v3970_v17 }
 0x1f9   : > { %v1505_v3 = vpop.f32.mrf.mxu3 }
 0x1fa   : > { %v1506_v58 = vadd.f32 %v1505_v3, %v1296_v35  ;;  %v4640_v35 = vld [vmem:[#allocation25_spill] sm:$0xff]  ;;  %v4641_v3 = vld [vmem:[#allocation26_spill] sm:$0xff] }
 0x1fc   : > { %2695 = vst [vmem:[%s3944_s28 + $0x38] sm:$0xff] %v1506_v58 }
 0x1fd   : > { %1346 = vmatmul.f32.gmra.mxu2 %v3983_v44  ;;  %v1717_v59 = vpop.f32.mrf.mxu0  ;;  %v1926_v38 = vpop.f32.mrf.mxu1 }
 0x1fe   : > { %1555 = vmatmul.f32.gmra.mxu3 %v3986_v45  ;;  %v1927_v50 = vadd.f32 %v1926_v38, %v1717_v59 }
 0x200   : > { %v1299_v51 = vpop.f32.mrf.mxu2  ;;  %2699 = vst [vmem:[%s3944_s28 + $0x58] sm:$0xff] %v1927_v50  ;;  %1764 = vmatmul.f32.gmra.mxu0 %v3983_v44  ;;  %1973 = vmatmul.f32.gmra.mxu1 %v3986_v45 }
 0x201   : > { %v1508_v40 = vpop.f32.mrf.mxu3 }
 0x202   : > { %v1509_v12 = vadd.f32 %v1508_v40, %v1299_v51 }
 0x204   : > { %2698 = vst [vmem:[%s3944_s28 + $0x50] sm:$0xff] %v1509_v12  ;;  %v4642_v12 = vld [vmem:[#allocation27_spill] sm:$0xff] }
 0x205   : > { %1349 = vmatmul.f32.gmra.mxu2 %v3995_v0  ;;  %v1720_v17 = vpop.f32.mrf.mxu0  ;;  %v1929_v41 = vpop.f32.mrf.mxu1 }
 0x206   : > { %1558 = vmatmul.f32.gmra.mxu3 %v3998_v7  ;;  %v1930_v25 = vadd.f32 %v1929_v41, %v1720_v17  ;;  %v4643_v17 = vld [vmem:[#allocation28_spill] sm:$0xff] }
 0x208   : > { %v1302_v10 = vpop.f32.mrf.mxu2  ;;  %2702 = vst [vmem:[%s3944_s28 + $0x70] sm:$0xff] %v1930_v25  ;;  %1767 = vmatmul.f32.gmra.mxu0 %v3995_v0  ;;  %1976 = vmatmul.f32.gmra.mxu1 %v3998_v7 }
 0x209   : > { %v1511_v11 = vpop.f32.mrf.mxu3 }
 0x20a   : > { %v1512_v44 = vadd.f32 %v1511_v11, %v1302_v10 }
 0x20c   : > { %2701 = vst [vmem:[%s3944_s28 + $0x68] sm:$0xff] %v1512_v44 }
 0x20d   : > { %1352 = vmatmul.f32.gmra.mxu2 %v4011_v42  ;;  %v1723_v45 = vpop.f32.mrf.mxu0  ;;  %v1932_v29 = vpop.f32.mrf.mxu1 }
 0x20e   : > { %1561 = vmatmul.f32.gmra.mxu3 %v4014_v43  ;;  %v1933_v48 = vadd.f32 %v1932_v29, %v1723_v45  ;;  %v4644_v29 = vld [vmem:[#allocation29_spill] sm:$0xff] }
 0x210   : > { %v1305_v49 = vpop.f32.mrf.mxu2  ;;  %2705 = vst [vmem:[%s3944_s28 + $0x88] sm:$0xff] %v1933_v48  ;;  %1770 = vmatmul.f32.gmra.mxu0 %v4011_v42  ;;  %1979 = vmatmul.f32.gmra.mxu1 %v4014_v43 }
 0x211   : > { %v1514_v36 = vpop.f32.mrf.mxu3 }
 0x212   : > { %v1515_v0 = vadd.f32 %v1514_v36, %v1305_v49 }
 0x214   : > { %2704 = vst [vmem:[%s3944_s28 + $0x80] sm:$0xff] %v1515_v0 }
 0x215   : > { %1355 = vmatmul.f32.gmra.mxu2 %v4023_v1  ;;  %v1726_v7 = vpop.f32.mrf.mxu0  ;;  %v1935_v37 = vpop.f32.mrf.mxu1 }
 0x216   : > { %1564 = vmatmul.f32.gmra.mxu3 %v4026_v16  ;;  %v1936_v54 = vadd.f32 %v1935_v37, %v1726_v7 }
 0x218   : > { %v1308_v14 = vpop.f32.mrf.mxu2  ;;  %2708 = vst [vmem:[%s3944_s28 + $0xa0] sm:$0xff] %v1936_v54  ;;  %1773 = vmatmul.f32.gmra.mxu0 %v4023_v1  ;;  %1982 = vmatmul.f32.gmra.mxu1 %v4026_v16  ;;  %v4645_v54 = vld [vmem:[#allocation30_spill] sm:$0xff] }
 0x219   : > { %v1517_v56 = vpop.f32.mrf.mxu3 }
 0x21a   : > { %v1518_v42 = vadd.f32 %v1517_v56, %v1308_v14 }
 0x21c   : > { %2707 = vst [vmem:[%s3944_s28 + $0x98] sm:$0xff] %v1518_v42 }
 0x21d   : > { %1358 = vmatmul.f32.gmra.mxu2 %v4039_v52  ;;  %v1729_v43 = vpop.f32.mrf.mxu0  ;;  %v1938_v57 = vpop.f32.mrf.mxu1 }
 0x21e   : > { %1567 = vmatmul.f32.gmra.mxu3 %v4042_v53  ;;  %v1939_v15 = vadd.f32 %v1938_v57, %v1729_v43 }
 0x220   : > { %v1311_v55 = vpop.f32.mrf.mxu2  ;;  %2711 = vst [vmem:[%s3944_s28 + $0xb8] sm:$0xff] %v1939_v15  ;;  %1776 = vmatmul.f32.gmra.mxu0 %v4039_v52  ;;  %1985 = vmatmul.f32.gmra.mxu1 %v4042_v53  ;;  %v4635_v53 = vld [vmem:[#allocation20_spill] sm:$0xff] }
 0x221   : > { %v1520_v39 = vpop.f32.mrf.mxu3  ;;  %v3214_v15 = vld [vmem:[%s3686_s24 + $0x200] sm:$0xff] }
 0x222   : > { %v1521_v1 = vadd.f32 %v1520_v39, %v1311_v55  ;;  %v3215_v55 = vld [vmem:[%s3686_s24 + $0x208] sm:$0xff] }
 0x224   : > { %2710 = vst [vmem:[%s3944_s28 + $0xb0] sm:$0xff] %v1521_v1 }
 0x225   : > { %1361 = vmatmul.f32.gmra.mxu2 %v4051_v24  ;;  %v1732_v16 = vpop.f32.mrf.mxu0  ;;  %v1941_v32 = vpop.f32.mrf.mxu1 }
 0x226   : > { %1570 = vmatmul.f32.gmra.mxu3 %v4054_v30  ;;  %v1942_v4 = vadd.f32 %v1941_v32, %v1732_v16 }
 0x228   : > { %v1314_v5 = vpop.f32.mrf.mxu2  ;;  %2714 = vst [vmem:[%s3944_s28 + $0xd0] sm:$0xff] %v1942_v4  ;;  %1779 = vmatmul.f32.gmra.mxu0 %v4051_v24  ;;  %1988 = vmatmul.f32.gmra.mxu1 %v4054_v30  ;;  %v4637_v30 = vld [vmem:[#allocation22_spill] sm:$0xff] }
 0x229   : > { %v1523_v46 = vpop.f32.mrf.mxu3 }
 0x22a   : > { %v1524_v52 = vadd.f32 %v1523_v46, %v1314_v5  ;;  %v3216_v5 = vld [vmem:[%s3686_s24 + $0x210] sm:$0xff]  ;;  %v3217_v46 = vld [vmem:[%s3686_s24 + $0x218] sm:$0xff] }
 0x22c   : > { %2713 = vst [vmem:[%s3944_s28 + $0xc8] sm:$0xff] %v1524_v52 }
 0x22d   : > { %1364 = vmatmul.f32.gmra.mxu2 %v4635_v53  ;;  %v1735_v23 = vpop.f32.mrf.mxu0  ;;  %v1944_v61 = vpop.f32.mrf.mxu1 }
 0x22e   : > { %1573 = vmatmul.f32.gmra.mxu3 %v4636_v22  ;;  %v1945_v8 = vadd.f32 %v1944_v61, %v1735_v23 }
 0x230   : > { %v1317_v9 = vpop.f32.mrf.mxu2  ;;  %2717 = vst [vmem:[%s3944_s28 + $0xe8] sm:$0xff] %v1945_v8  ;;  %1782 = vmatmul.f32.gmra.mxu0 %v4635_v53  ;;  %1991 = vmatmul.f32.gmra.mxu1 %v4636_v22 }
 0x231   : > { %v1526_v62 = vpop.f32.mrf.mxu3 }
 0x232   : > { %v1527_v24 = vadd.f32 %v1526_v62, %v1317_v9  ;;  %v3218_v9 = vld [vmem:[%s3686_s24 + $0x220] sm:$0xff]  ;;  %v3219_v62 = vld [vmem:[%s3686_s24 + $0x228] sm:$0xff] }
 0x234   : > { %2716 = vst [vmem:[%s3944_s28 + $0xe0] sm:$0xff] %v1527_v24 }
 0x235   : > { %1367 = vmatmul.f32.gmra.mxu2 %v4079_v60  ;;  %v1738_v63 = vpop.f32.mrf.mxu0  ;;  %v1947_v6 = vpop.f32.mrf.mxu1 }
 0x236   : > { %1576 = vmatmul.f32.gmra.mxu3 %v4637_v30  ;;  %v1948_v26 = vadd.f32 %v1947_v6, %v1738_v63 }
 0x238   : > { %v1320_v20 = vpop.f32.mrf.mxu2  ;;  %2720 = vst [vmem:[%s3944_s28 + $0x100] sm:$0xff] %v1948_v26  ;;  %1785 = vmatmul.f32.gmra.mxu0 %v4079_v60  ;;  %1994 = vmatmul.f32.gmra.mxu1 %v4637_v30 }
 0x239   : > { %v1529_v21 = vpop.f32.mrf.mxu3 }
 0x23a   : > { %v1530_v27 = vadd.f32 %v1529_v21, %v1320_v20  ;;  %v3220_v21 = vld [vmem:[%s3686_s24 + $0x230] sm:$0xff] }
 0x23c   : > { %2719 = vst [vmem:[%s3944_s28 + $0xf8] sm:$0xff] %v1530_v27  ;;  %v3221_v27 = vld [vmem:[%s3686_s24 + $0x238] sm:$0xff] }
 0x23d   : > { %1370 = vmatmul.f32.gmra.mxu2 %v4638_v18  ;;  %v1741_v47 = vpop.f32.mrf.mxu0  ;;  %v1950_v28 = vpop.f32.mrf.mxu1 }
 0x23e   : > { %1579 = vmatmul.f32.gmra.mxu3 %v4639_v33  ;;  %v1951_v31 = vadd.f32 %v1950_v28, %v1741_v47 }
 0x240   : > { %v1323_v2 = vpop.f32.mrf.mxu2  ;;  %2723 = vst [vmem:[%s3944_s28 + $0x118] sm:$0xff] %v1951_v31  ;;  %1788 = vmatmul.f32.gmra.mxu0 %v4638_v18  ;;  %1997 = vmatmul.f32.gmra.mxu1 %v4639_v33 }
 0x241   : > { %v1532_v34 = vpop.f32.mrf.mxu3 }
 0x242   : > { %v1533_v60 = vadd.f32 %v1532_v34, %v1323_v2  ;;  %v3222_v34 = vld [vmem:[%s3686_s24 + $0x240] sm:$0xff] }
 0x244   : > { %2722 = vst [vmem:[%s3944_s28 + $0x110] sm:$0xff] %v1533_v60  ;;  %v3223_v60 = vld [vmem:[%s3686_s24 + $0x248] sm:$0xff] }
 0x245   : > { %1373 = vmatmul.f32.gmra.mxu2 %v4640_v35  ;;  %v1744_v58 = vpop.f32.mrf.mxu0  ;;  %v1953_v59 = vpop.f32.mrf.mxu1 }
 0x246   : > { %1582 = vmatmul.f32.gmra.mxu3 %v4641_v3  ;;  %v1954_v38 = vadd.f32 %v1953_v59, %v1744_v58 }
 0x248   : > { %v1326_v50 = vpop.f32.mrf.mxu2  ;;  %2726 = vst [vmem:[%s3944_s28 + $0x130] sm:$0xff] %v1954_v38  ;;  %1791 = vmatmul.f32.gmra.mxu0 %v4640_v35  ;;  %2000 = vmatmul.f32.gmra.mxu1 %v4641_v3 }
 0x249   : > { %v1535_v51 = vpop.f32.mrf.mxu3 }
 0x24a   : > { %v1536_v40 = vadd.f32 %v1535_v51, %v1326_v50  ;;  %v3224_v51 = vld [vmem:[%s3686_s24 + $0x250] sm:$0xff] }
 0x24c   : > { %2725 = vst [vmem:[%s3944_s28 + $0x128] sm:$0xff] %v1536_v40  ;;  %v3225_v40 = vld [vmem:[%s3686_s24 + $0x258] sm:$0xff] }
 0x24d   : > { %1376 = vmatmul.f32.gmra.mxu2 %v4642_v12  ;;  %v1747_v41 = vpop.f32.mrf.mxu0  ;;  %v1956_v25 = vpop.f32.mrf.mxu1 }
 0x24e   : > { %1585 = vmatmul.f32.gmra.mxu3 %v4643_v17  ;;  %v1957_v10 = vadd.f32 %v1956_v25, %v1747_v41 }
 0x250   : > { %v1329_v11 = vpop.f32.mrf.mxu2  ;;  %2729 = vst [vmem:[%s3944_s28 + $0x148] sm:$0xff] %v1957_v10  ;;  %1794 = vmatmul.f32.gmra.mxu0 %v4642_v12  ;;  %2003 = vmatmul.f32.gmra.mxu1 %v4643_v17 }
 0x251   : > { %v1538_v44 = vpop.f32.mrf.mxu3 }
 0x252   : > { %v1539_v45 = vadd.f32 %v1538_v44, %v1329_v11  ;;  %v3226_v44 = vld [vmem:[%s3686_s24 + $0x260] sm:$0xff] }
 0x254   : > { %2728 = vst [vmem:[%s3944_s28 + $0x140] sm:$0xff] %v1539_v45  ;;  %v3227_v45 = vld [vmem:[%s3686_s24 + $0x268] sm:$0xff] }
 0x255   : > { %1379 = vmatmul.f32.gmra.mxu2 %v4131_v19  ;;  %v1750_v48 = vpop.f32.mrf.mxu0  ;;  %v1959_v49 = vpop.f32.mrf.mxu1 }
 0x256   : > { %1588 = vmatmul.f32.gmra.mxu3 %v4644_v29  ;;  %v1960_v36 = vadd.f32 %v1959_v49, %v1750_v48 }
 0x258   : > { %v1332_v0 = vpop.f32.mrf.mxu2  ;;  %2732 = vst [vmem:[%s3944_s28 + $0x160] sm:$0xff] %v1960_v36  ;;  %1797 = vmatmul.f32.gmra.mxu0 %v4131_v19  ;;  %2006 = vmatmul.f32.gmra.mxu1 %v4644_v29 }
 0x259   : > { %v1541_v7 = vpop.f32.mrf.mxu3 }
 0x25a   : > { %v1542_v37 = vadd.f32 %v1541_v7, %v1332_v0 }
 0x25c   : > { %2731 = vst [vmem:[%s3944_s28 + $0x158] sm:$0xff] %v1542_v37  ;;  %v3228_v37 = vld [vmem:[%s3686_s24 + $0x270] sm:$0xff] }
 0x25d   : > { %1382 = vmatmul.f32.gmra.mxu2 %v4143_v13  ;;  %v1753_v14 = vpop.f32.mrf.mxu0  ;;  %v1962_v56 = vpop.f32.mrf.mxu1 }
 0x25e   : > { %1591 = vmatmul.f32.gmra.mxu3 %v4645_v54  ;;  %v1963_v42 = vadd.f32 %v1962_v56, %v1753_v14 }
 0x260   : > { %v1335_v43 = vpop.f32.mrf.mxu2  ;;  %2735 = vst [vmem:[%s3944_s28 + $0x178] sm:$0xff] %v1963_v42  ;;  %1800 = vmatmul.f32.gmra.mxu0 %v4143_v13  ;;  %2009 = vmatmul.f32.gmra.mxu1 %v4645_v54  ;;  %v3229_v54 = vld [vmem:[%s3686_s24 + $0x278] sm:$0xff] }
 0x261   : > { %v1544_v57 = vpop.f32.mrf.mxu3 }
 0x262   : > { %v1545_v19 = vadd.f32 %v1544_v57, %v1335_v43 }
 0x264   : > { %2734 = vst [vmem:[%s3944_s28 + $0x170] sm:$0xff] %v1545_v19 }
 0x265   : > { %1385 = vmatmul.f32.gmra.mxu2 %v3214_v15  ;;  %v1756_v39 = vpop.f32.mrf.mxu0  ;;  %v1965_v1 = vpop.f32.mrf.mxu1 }
 0x266   : > { %1594 = vmatmul.f32.gmra.mxu3 %v3215_v55  ;;  %v1966_v16 = vadd.f32 %v1965_v1, %v1756_v39 }
 0x268   : > { %v1338_v32 = vpop.f32.mrf.mxu2  ;;  %2738 = vst [vmem:[%s3944_s28 + $0x190] sm:$0xff] %v1966_v16  ;;  %1803 = vmatmul.f32.gmra.mxu0 %v3214_v15  ;;  %2012 = vmatmul.f32.gmra.mxu1 %v3215_v55  ;;  %v3230_v15 = vld [vmem:[%s3686_s24 + $0x280] sm:$0xff]  ;;  %v3231_v55 = vld [vmem:[%s3686_s24 + $0x288] sm:$0xff] }
 0x269   : > { %v1547_v4 = vpop.f32.mrf.mxu3 }
 0x26a   : > { %v1548_v13 = vadd.f32 %v1547_v4, %v1338_v32 }
 0x26c   : > { %2737 = vst [vmem:[%s3944_s28 + $0x188] sm:$0xff] %v1548_v13 }
 0x26d   : > { %1388 = vmatmul.f32.gmra.mxu2 %v3216_v5  ;;  %v1759_v52 = vpop.f32.mrf.mxu0  ;;  %v1968_v53 = vpop.f32.mrf.mxu1 }
 0x26e   : > { %1597 = vmatmul.f32.gmra.mxu3 %v3217_v46  ;;  %v1969_v22 = vadd.f32 %v1968_v53, %v1759_v52 }
 0x270   : > { %v1341_v23 = vpop.f32.mrf.mxu2  ;;  %2741 = vst [vmem:[%s3944_s28 + $0x1a8] sm:$0xff] %v1969_v22  ;;  %1806 = vmatmul.f32.gmra.mxu0 %v3216_v5  ;;  %2015 = vmatmul.f32.gmra.mxu1 %v3217_v46  ;;  %v3232_v5 = vld [vmem:[%s3686_s24 + $0x290] sm:$0xff]  ;;  %v3233_v46 = vld [vmem:[%s3686_s24 + $0x298] sm:$0xff] }
 0x271   : > { %v1550_v61 = vpop.f32.mrf.mxu3 }
 0x272   : > { %v1551_v8 = vadd.f32 %v1550_v61, %v1341_v23 }
 0x274   : > { %2740 = vst [vmem:[%s3944_s28 + $0x1a0] sm:$0xff] %v1551_v8 }
 0x275   : > { %1391 = vmatmul.f32.gmra.mxu2 %v3218_v9  ;;  %v1762_v24 = vpop.f32.mrf.mxu0  ;;  %v1971_v30 = vpop.f32.mrf.mxu1 }
 0x276   : > { %1600 = vmatmul.f32.gmra.mxu3 %v3219_v62  ;;  %v1972_v63 = vadd.f32 %v1971_v30, %v1762_v24 }
 0x278   : > { %v1344_v6 = vpop.f32.mrf.mxu2  ;;  %2744 = vst [vmem:[%s3944_s28 + $0x1c0] sm:$0xff] %v1972_v63  ;;  %1809 = vmatmul.f32.gmra.mxu0 %v3218_v9  ;;  %2018 = vmatmul.f32.gmra.mxu1 %v3219_v62  ;;  %v3234_v9 = vld [vmem:[%s3686_s24 + $0x2a0] sm:$0xff]  ;;  %v3235_v62 = vld [vmem:[%s3686_s24 + $0x2a8] sm:$0xff] }
 0x279   : > { %v1553_v26 = vpop.f32.mrf.mxu3 }
 0x27a   : > { %v1554_v20 = vadd.f32 %v1553_v26, %v1344_v6 }
 0x27c   : > { %2743 = vst [vmem:[%s3944_s28 + $0x1b8] sm:$0xff] %v1554_v20 }
 0x27d   : > { %1394 = vmatmul.f32.gmra.mxu2 %v3220_v21  ;;  %v1765_v18 = vpop.f32.mrf.mxu0  ;;  %v1974_v33 = vpop.f32.mrf.mxu1 }
 0x27e   : > { %1603 = vmatmul.f32.gmra.mxu3 %v3221_v27  ;;  %v1975_v47 = vadd.f32 %v1974_v33, %v1765_v18 }
 0x280   : > { %v1347_v28 = vpop.f32.mrf.mxu2  ;;  %2747 = vst [vmem:[%s3944_s28 + $0x1d8] sm:$0xff] %v1975_v47  ;;  %1812 = vmatmul.f32.gmra.mxu0 %v3220_v21  ;;  %2021 = vmatmul.f32.gmra.mxu1 %v3221_v27  ;;  %v3236_v21 = vld [vmem:[%s3686_s24 + $0x2b0] sm:$0xff]  ;;  %v3237_v27 = vld [vmem:[%s3686_s24 + $0x2b8] sm:$0xff] }
 0x281   : > { %v1556_v31 = vpop.f32.mrf.mxu3 }
 0x282   : > { %v1557_v2 = vadd.f32 %v1556_v31, %v1347_v28 }
 0x284   : > { %2746 = vst [vmem:[%s3944_s28 + $0x1d0] sm:$0xff] %v1557_v2 }
 0x285   : > { %1397 = vmatmul.f32.gmra.mxu2 %v3222_v34  ;;  %v1768_v35 = vpop.f32.mrf.mxu0  ;;  %v1977_v3 = vpop.f32.mrf.mxu1 }
 0x286   : > { %1606 = vmatmul.f32.gmra.mxu3 %v3223_v60  ;;  %v1978_v58 = vadd.f32 %v1977_v3, %v1768_v35 }
 0x288   : > { %v1350_v59 = vpop.f32.mrf.mxu2  ;;  %2750 = vst [vmem:[%s3944_s28 + $0x1f0] sm:$0xff] %v1978_v58  ;;  %1815 = vmatmul.f32.gmra.mxu0 %v3222_v34  ;;  %2024 = vmatmul.f32.gmra.mxu1 %v3223_v60  ;;  %v3238_v34 = vld [vmem:[%s3686_s24 + $0x2c0] sm:$0xff]  ;;  %v3239_v60 = vld [vmem:[%s3686_s24 + $0x2c8] sm:$0xff] }
 0x289   : > { %v1559_v38 = vpop.f32.mrf.mxu3 }
 0x28a   : > { %v1560_v50 = vadd.f32 %v1559_v38, %v1350_v59 }
 0x28c   : > { %2749 = vst [vmem:[%s3944_s28 + $0x1e8] sm:$0xff] %v1560_v50 }
 0x28d   : > { %1400 = vmatmul.f32.gmra.mxu2 %v3224_v51  ;;  %v1771_v12 = vpop.f32.mrf.mxu0  ;;  %v1980_v17 = vpop.f32.mrf.mxu1 }
 0x28e   : > { %1609 = vmatmul.f32.gmra.mxu3 %v3225_v40  ;;  %v1981_v41 = vadd.f32 %v1980_v17, %v1771_v12 }
 0x290   : > { %v1353_v25 = vpop.f32.mrf.mxu2  ;;  %2753 = vst [vmem:[%s3944_s28 + $0x208] sm:$0xff] %v1981_v41  ;;  %1818 = vmatmul.f32.gmra.mxu0 %v3224_v51  ;;  %2027 = vmatmul.f32.gmra.mxu1 %v3225_v40  ;;  %v3240_v51 = vld [vmem:[%s3686_s24 + $0x2d0] sm:$0xff]  ;;  %v3241_v40 = vld [vmem:[%s3686_s24 + $0x2d8] sm:$0xff] }
 0x291   : > { %v1562_v10 = vpop.f32.mrf.mxu3 }
 0x292   : > { %v1563_v11 = vadd.f32 %v1562_v10, %v1353_v25 }
 0x294   : > { %2752 = vst [vmem:[%s3944_s28 + $0x200] sm:$0xff] %v1563_v11 }
 0x295   : > { %1403 = vmatmul.f32.gmra.mxu2 %v3226_v44  ;;  %v1774_v29 = vpop.f32.mrf.mxu0  ;;  %v1983_v48 = vpop.f32.mrf.mxu1 }
 0x296   : > { %1612 = vmatmul.f32.gmra.mxu3 %v3227_v45  ;;  %v1984_v49 = vadd.f32 %v1983_v48, %v1774_v29 }
 0x298   : > { %v1356_v36 = vpop.f32.mrf.mxu2  ;;  %2756 = vst [vmem:[%s3944_s28 + $0x220] sm:$0xff] %v1984_v49  ;;  %1821 = vmatmul.f32.gmra.mxu0 %v3226_v44  ;;  %2030 = vmatmul.f32.gmra.mxu1 %v3227_v45  ;;  %v3242_v44 = vld [vmem:[%s3686_s24 + $0x2e0] sm:$0xff]  ;;  %v3243_v45 = vld [vmem:[%s3686_s24 + $0x2e8] sm:$0xff] }
 0x299   : > { %v1565_v0 = vpop.f32.mrf.mxu3 }
 0x29a   : > { %v1566_v7 = vadd.f32 %v1565_v0, %v1356_v36 }
 0x29c   : > { %2755 = vst [vmem:[%s3944_s28 + $0x218] sm:$0xff] %v1566_v7 }
 0x29d   : > { %1406 = vmatmul.f32.gmra.mxu2 %v3228_v37  ;;  %v1777_v14 = vpop.f32.mrf.mxu0  ;;  %v1986_v56 = vpop.f32.mrf.mxu1 }
 0x29e   : > { %1615 = vmatmul.f32.gmra.mxu3 %v3229_v54  ;;  %v1987_v42 = vadd.f32 %v1986_v56, %v1777_v14 }
 0x2a0   : > { %v1359_v43 = vpop.f32.mrf.mxu2  ;;  %2759 = vst [vmem:[%s3944_s28 + $0x238] sm:$0xff] %v1987_v42  ;;  %1824 = vmatmul.f32.gmra.mxu0 %v3228_v37  ;;  %2033 = vmatmul.f32.gmra.mxu1 %v3229_v54  ;;  %v3244_v37 = vld [vmem:[%s3686_s24 + $0x2f0] sm:$0xff]  ;;  %v3245_v54 = vld [vmem:[%s3686_s24 + $0x2f8] sm:$0xff] }
 0x2a1   : > { %v1568_v57 = vpop.f32.mrf.mxu3 }
 0x2a2   : > { %v1569_v19 = vadd.f32 %v1568_v57, %v1359_v43 }
 0x2a4   : > { %2758 = vst [vmem:[%s3944_s28 + $0x230] sm:$0xff] %v1569_v19 }
 0x2a5   : > { %1409 = vmatmul.f32.gmra.mxu2 %v3230_v15  ;;  %v1780_v39 = vpop.f32.mrf.mxu0  ;;  %v1989_v1 = vpop.f32.mrf.mxu1 }
 0x2a6   : > { %1618 = vmatmul.f32.gmra.mxu3 %v3231_v55  ;;  %v1990_v16 = vadd.f32 %v1989_v1, %v1780_v39 }
 0x2a8   : > { %v1362_v32 = vpop.f32.mrf.mxu2  ;;  %2762 = vst [vmem:[%s3944_s28 + $0x250] sm:$0xff] %v1990_v16  ;;  %1827 = vmatmul.f32.gmra.mxu0 %v3230_v15  ;;  %2036 = vmatmul.f32.gmra.mxu1 %v3231_v55  ;;  %v3246_v15 = vld [vmem:[%s3686_s24 + $0x300] sm:$0xff]  ;;  %v3247_v55 = vld [vmem:[%s3686_s24 + $0x308] sm:$0xff] }
 0x2a9   : > { %v1571_v4 = vpop.f32.mrf.mxu3 }
 0x2aa   : > { %v1572_v13 = vadd.f32 %v1571_v4, %v1362_v32 }
 0x2ac   : > { %2761 = vst [vmem:[%s3944_s28 + $0x248] sm:$0xff] %v1572_v13 }
 0x2ad   : > { %1412 = vmatmul.f32.gmra.mxu2 %v3232_v5  ;;  %v1783_v52 = vpop.f32.mrf.mxu0  ;;  %v1992_v53 = vpop.f32.mrf.mxu1 }
 0x2ae   : > { %1621 = vmatmul.f32.gmra.mxu3 %v3233_v46  ;;  %v1993_v22 = vadd.f32 %v1992_v53, %v1783_v52 }
 0x2b0   : > { %v1365_v23 = vpop.f32.mrf.mxu2  ;;  %2765 = vst [vmem:[%s3944_s28 + $0x268] sm:$0xff] %v1993_v22  ;;  %1830 = vmatmul.f32.gmra.mxu0 %v3232_v5  ;;  %2039 = vmatmul.f32.gmra.mxu1 %v3233_v46  ;;  %v3248_v5 = vld [vmem:[%s3686_s24 + $0x310] sm:$0xff]  ;;  %v3249_v46 = vld [vmem:[%s3686_s24 + $0x318] sm:$0xff] }
 0x2b1   : > { %v1574_v61 = vpop.f32.mrf.mxu3 }
 0x2b2   : > { %v1575_v8 = vadd.f32 %v1574_v61, %v1365_v23 }
 0x2b4   : > { %2764 = vst [vmem:[%s3944_s28 + $0x260] sm:$0xff] %v1575_v8 }
 0x2b5   : > { %1415 = vmatmul.f32.gmra.mxu2 %v3234_v9  ;;  %v1786_v24 = vpop.f32.mrf.mxu0  ;;  %v1995_v30 = vpop.f32.mrf.mxu1 }
 0x2b6   : > { %1624 = vmatmul.f32.gmra.mxu3 %v3235_v62  ;;  %v1996_v63 = vadd.f32 %v1995_v30, %v1786_v24 }
 0x2b8   : > { %v1368_v6 = vpop.f32.mrf.mxu2  ;;  %2768 = vst [vmem:[%s3944_s28 + $0x280] sm:$0xff] %v1996_v63  ;;  %1833 = vmatmul.f32.gmra.mxu0 %v3234_v9  ;;  %2042 = vmatmul.f32.gmra.mxu1 %v3235_v62  ;;  %v3250_v9 = vld [vmem:[%s3686_s24 + $0x320] sm:$0xff]  ;;  %v3251_v62 = vld [vmem:[%s3686_s24 + $0x328] sm:$0xff] }
 0x2b9   : > { %v1577_v26 = vpop.f32.mrf.mxu3 }
 0x2ba   : > { %v1578_v20 = vadd.f32 %v1577_v26, %v1368_v6 }
 0x2bc   : > { %2767 = vst [vmem:[%s3944_s28 + $0x278] sm:$0xff] %v1578_v20 }
 0x2bd   : > { %1418 = vmatmul.f32.gmra.mxu2 %v3236_v21  ;;  %v1789_v18 = vpop.f32.mrf.mxu0  ;;  %v1998_v33 = vpop.f32.mrf.mxu1 }
 0x2be   : > { %1627 = vmatmul.f32.gmra.mxu3 %v3237_v27  ;;  %v1999_v47 = vadd.f32 %v1998_v33, %v1789_v18 }
 0x2c0   : > { %v1371_v28 = vpop.f32.mrf.mxu2  ;;  %2771 = vst [vmem:[%s3944_s28 + $0x298] sm:$0xff] %v1999_v47  ;;  %1836 = vmatmul.f32.gmra.mxu0 %v3236_v21  ;;  %2045 = vmatmul.f32.gmra.mxu1 %v3237_v27  ;;  %v3252_v21 = vld [vmem:[%s3686_s24 + $0x330] sm:$0xff]  ;;  %v3253_v27 = vld [vmem:[%s3686_s24 + $0x338] sm:$0xff] }
 0x2c1   : > { %v1580_v31 = vpop.f32.mrf.mxu3 }
 0x2c2   : > { %v1581_v2 = vadd.f32 %v1580_v31, %v1371_v28 }
 0x2c4   : > { %2770 = vst [vmem:[%s3944_s28 + $0x290] sm:$0xff] %v1581_v2 }
 0x2c5   : > { %1421 = vmatmul.f32.gmra.mxu2 %v3238_v34  ;;  %v1792_v35 = vpop.f32.mrf.mxu0  ;;  %v2001_v3 = vpop.f32.mrf.mxu1 }
 0x2c6   : > { %1630 = vmatmul.f32.gmra.mxu3 %v3239_v60  ;;  %v2002_v58 = vadd.f32 %v2001_v3, %v1792_v35 }
 0x2c8   : > { %v1374_v59 = vpop.f32.mrf.mxu2  ;;  %2774 = vst [vmem:[%s3944_s28 + $0x2b0] sm:$0xff] %v2002_v58  ;;  %1839 = vmatmul.f32.gmra.mxu0 %v3238_v34  ;;  %2048 = vmatmul.f32.gmra.mxu1 %v3239_v60  ;;  %v3254_v34 = vld [vmem:[%s3686_s24 + $0x340] sm:$0xff]  ;;  %v3255_v60 = vld [vmem:[%s3686_s24 + $0x348] sm:$0xff] }
 0x2c9   : > { %v1583_v38 = vpop.f32.mrf.mxu3 }
 0x2ca   : > { %v1584_v50 = vadd.f32 %v1583_v38, %v1374_v59 }
 0x2cc   : > { %2773 = vst [vmem:[%s3944_s28 + $0x2a8] sm:$0xff] %v1584_v50 }
 0x2cd   : > { %1424 = vmatmul.f32.gmra.mxu2 %v3240_v51  ;;  %v1795_v12 = vpop.f32.mrf.mxu0  ;;  %v2004_v17 = vpop.f32.mrf.mxu1 }
 0x2ce   : > { %1633 = vmatmul.f32.gmra.mxu3 %v3241_v40  ;;  %v2005_v41 = vadd.f32 %v2004_v17, %v1795_v12 }
 0x2d0   : > { %v1377_v25 = vpop.f32.mrf.mxu2  ;;  %2777 = vst [vmem:[%s3944_s28 + $0x2c8] sm:$0xff] %v2005_v41  ;;  %1842 = vmatmul.f32.gmra.mxu0 %v3240_v51  ;;  %2051 = vmatmul.f32.gmra.mxu1 %v3241_v40  ;;  %v3256_v51 = vld [vmem:[%s3686_s24 + $0x350] sm:$0xff]  ;;  %v3257_v40 = vld [vmem:[%s3686_s24 + $0x358] sm:$0xff] }
 0x2d1   : > { %v1586_v10 = vpop.f32.mrf.mxu3 }
 0x2d2   : > { %v1587_v11 = vadd.f32 %v1586_v10, %v1377_v25 }
 0x2d4   : > { %2776 = vst [vmem:[%s3944_s28 + $0x2c0] sm:$0xff] %v1587_v11 }
 0x2d5   : > { %1427 = vmatmul.f32.gmra.mxu2 %v3242_v44  ;;  %v1798_v29 = vpop.f32.mrf.mxu0  ;;  %v2007_v48 = vpop.f32.mrf.mxu1 }
 0x2d6   : > { %1636 = vmatmul.f32.gmra.mxu3 %v3243_v45  ;;  %v2008_v49 = vadd.f32 %v2007_v48, %v1798_v29 }
 0x2d8   : > { %v1380_v36 = vpop.f32.mrf.mxu2  ;;  %2780 = vst [vmem:[%s3944_s28 + $0x2e0] sm:$0xff] %v2008_v49  ;;  %1845 = vmatmul.f32.gmra.mxu0 %v3242_v44  ;;  %2054 = vmatmul.f32.gmra.mxu1 %v3243_v45  ;;  %v3258_v44 = vld [vmem:[%s3686_s24 + $0x360] sm:$0xff]  ;;  %v3259_v45 = vld [vmem:[%s3686_s24 + $0x368] sm:$0xff] }
 0x2d9   : > { %v1589_v0 = vpop.f32.mrf.mxu3 }
 0x2da   : > { %v1590_v7 = vadd.f32 %v1589_v0, %v1380_v36 }
 0x2dc   : > { %2779 = vst [vmem:[%s3944_s28 + $0x2d8] sm:$0xff] %v1590_v7 }
 0x2dd   : > { %1430 = vmatmul.f32.gmra.mxu2 %v3244_v37  ;;  %v1801_v14 = vpop.f32.mrf.mxu0  ;;  %v2010_v56 = vpop.f32.mrf.mxu1 }
 0x2de   : > { %1639 = vmatmul.f32.gmra.mxu3 %v3245_v54  ;;  %v2011_v42 = vadd.f32 %v2010_v56, %v1801_v14 }
 0x2e0   : > { %v1383_v43 = vpop.f32.mrf.mxu2  ;;  %2783 = vst [vmem:[%s3944_s28 + $0x2f8] sm:$0xff] %v2011_v42  ;;  %1848 = vmatmul.f32.gmra.mxu0 %v3244_v37  ;;  %2057 = vmatmul.f32.gmra.mxu1 %v3245_v54  ;;  %v3260_v37 = vld [vmem:[%s3686_s24 + $0x370] sm:$0xff]  ;;  %v3261_v54 = vld [vmem:[%s3686_s24 + $0x378] sm:$0xff] }
 0x2e1   : > { %v1592_v57 = vpop.f32.mrf.mxu3 }
 0x2e2   : > { %v1593_v19 = vadd.f32 %v1592_v57, %v1383_v43 }
 0x2e4   : > { %2782 = vst [vmem:[%s3944_s28 + $0x2f0] sm:$0xff] %v1593_v19 }
 0x2e5   : > { %1433 = vmatmul.f32.gmra.mxu2 %v3246_v15  ;;  %v1804_v39 = vpop.f32.mrf.mxu0  ;;  %v2013_v1 = vpop.f32.mrf.mxu1 }
 0x2e6   : > { %1642 = vmatmul.f32.gmra.mxu3 %v3247_v55  ;;  %v2014_v16 = vadd.f32 %v2013_v1, %v1804_v39 }
 0x2e8   : > { %v1386_v32 = vpop.f32.mrf.mxu2  ;;  %2786 = vst [vmem:[%s3944_s28 + $0x310] sm:$0xff] %v2014_v16  ;;  %1851 = vmatmul.f32.gmra.mxu0 %v3246_v15  ;;  %2060 = vmatmul.f32.gmra.mxu1 %v3247_v55  ;;  %v3262_v15 = vld [vmem:[%s3686_s24 + $0x380] sm:$0xff]  ;;  %v3263_v55 = vld [vmem:[%s3686_s24 + $0x388] sm:$0xff] }
 0x2e9   : > { %v1595_v4 = vpop.f32.mrf.mxu3 }
 0x2ea   : > { %v1596_v13 = vadd.f32 %v1595_v4, %v1386_v32 }
 0x2ec   : > { %2785 = vst [vmem:[%s3944_s28 + $0x308] sm:$0xff] %v1596_v13 }
 0x2ed   : > { %1436 = vmatmul.f32.gmra.mxu2 %v3248_v5  ;;  %v1807_v52 = vpop.f32.mrf.mxu0  ;;  %v2016_v53 = vpop.f32.mrf.mxu1 }
 0x2ee   : > { %1645 = vmatmul.f32.gmra.mxu3 %v3249_v46  ;;  %v2017_v22 = vadd.f32 %v2016_v53, %v1807_v52 }
 0x2f0   : > { %v1389_v23 = vpop.f32.mrf.mxu2  ;;  %2789 = vst [vmem:[%s3944_s28 + $0x328] sm:$0xff] %v2017_v22  ;;  %1854 = vmatmul.f32.gmra.mxu0 %v3248_v5  ;;  %2063 = vmatmul.f32.gmra.mxu1 %v3249_v46  ;;  %v3264_v5 = vld [vmem:[%s3686_s24 + $0x390] sm:$0xff]  ;;  %v3265_v46 = vld [vmem:[%s3686_s24 + $0x398] sm:$0xff] }
 0x2f1   : > { %v1598_v61 = vpop.f32.mrf.mxu3 }
 0x2f2   : > { %v1599_v8 = vadd.f32 %v1598_v61, %v1389_v23 }
 0x2f4   : > { %2788 = vst [vmem:[%s3944_s28 + $0x320] sm:$0xff] %v1599_v8 }
 0x2f5   : > { %1439 = vmatmul.f32.gmra.mxu2 %v3250_v9  ;;  %v1810_v24 = vpop.f32.mrf.mxu0  ;;  %v2019_v30 = vpop.f32.mrf.mxu1 }
 0x2f6   : > { %1648 = vmatmul.f32.gmra.mxu3 %v3251_v62  ;;  %v2020_v63 = vadd.f32 %v2019_v30, %v1810_v24 }
 0x2f8   : > { %v1392_v6 = vpop.f32.mrf.mxu2  ;;  %2792 = vst [vmem:[%s3944_s28 + $0x340] sm:$0xff] %v2020_v63  ;;  %1857 = vmatmul.f32.gmra.mxu0 %v3250_v9  ;;  %2066 = vmatmul.f32.gmra.mxu1 %v3251_v62  ;;  %v3266_v9 = vld [vmem:[%s3686_s24 + $0x3a0] sm:$0xff]  ;;  %v3267_v62 = vld [vmem:[%s3686_s24 + $0x3a8] sm:$0xff] }
 0x2f9   : > { %v1601_v26 = vpop.f32.mrf.mxu3 }
 0x2fa   : > { %v1602_v20 = vadd.f32 %v1601_v26, %v1392_v6 }
 0x2fc   : > { %2791 = vst [vmem:[%s3944_s28 + $0x338] sm:$0xff] %v1602_v20 }
 0x2fd   : > { %1442 = vmatmul.f32.gmra.mxu2 %v3252_v21  ;;  %v1813_v18 = vpop.f32.mrf.mxu0  ;;  %v2022_v33 = vpop.f32.mrf.mxu1 }
 0x2fe   : > { %1651 = vmatmul.f32.gmra.mxu3 %v3253_v27  ;;  %v2023_v47 = vadd.f32 %v2022_v33, %v1813_v18 }
 0x300   : > { %v1395_v28 = vpop.f32.mrf.mxu2  ;;  %2795 = vst [vmem:[%s3944_s28 + $0x358] sm:$0xff] %v2023_v47  ;;  %1860 = vmatmul.f32.gmra.mxu0 %v3252_v21  ;;  %2069 = vmatmul.f32.gmra.mxu1 %v3253_v27  ;;  %v3268_v21 = vld [vmem:[%s3686_s24 + $0x3b0] sm:$0xff]  ;;  %v3269_v27 = vld [vmem:[%s3686_s24 + $0x3b8] sm:$0xff] }
 0x301   : > { %v1604_v31 = vpop.f32.mrf.mxu3 }
 0x302   : > { %v1605_v2 = vadd.f32 %v1604_v31, %v1395_v28 }
 0x304   : > { %2794 = vst [vmem:[%s3944_s28 + $0x350] sm:$0xff] %v1605_v2 }
 0x305   : > { %1445 = vmatmul.f32.gmra.mxu2 %v3254_v34  ;;  %v1816_v35 = vpop.f32.mrf.mxu0  ;;  %v2025_v3 = vpop.f32.mrf.mxu1 }
 0x306   : > { %1654 = vmatmul.f32.gmra.mxu3 %v3255_v60  ;;  %v2026_v58 = vadd.f32 %v2025_v3, %v1816_v35 }
 0x308   : > { %v1398_v59 = vpop.f32.mrf.mxu2  ;;  %2798 = vst [vmem:[%s3944_s28 + $0x370] sm:$0xff] %v2026_v58  ;;  %1863 = vmatmul.f32.gmra.mxu0 %v3254_v34  ;;  %2072 = vmatmul.f32.gmra.mxu1 %v3255_v60  ;;  %v3270_v34 = vld [vmem:[%s3686_s24 + $0x3c0] sm:$0xff]  ;;  %v3271_v60 = vld [vmem:[%s3686_s24 + $0x3c8] sm:$0xff] }
 0x309   : > { %v1607_v38 = vpop.f32.mrf.mxu3 }
 0x30a   : > { %v1608_v50 = vadd.f32 %v1607_v38, %v1398_v59 }
 0x30c   : > { %2797 = vst [vmem:[%s3944_s28 + $0x368] sm:$0xff] %v1608_v50 }
 0x30d   : > { %1448 = vmatmul.f32.gmra.mxu2 %v3256_v51  ;;  %v1819_v12 = vpop.f32.mrf.mxu0  ;;  %v2028_v17 = vpop.f32.mrf.mxu1 }
 0x30e   : > { %1657 = vmatmul.f32.gmra.mxu3 %v3257_v40  ;;  %v2029_v41 = vadd.f32 %v2028_v17, %v1819_v12 }
 0x310   : > { %v1401_v25 = vpop.f32.mrf.mxu2  ;;  %2801 = vst [vmem:[%s3944_s28 + $0x388] sm:$0xff] %v2029_v41  ;;  %1866 = vmatmul.f32.gmra.mxu0 %v3256_v51  ;;  %2075 = vmatmul.f32.gmra.mxu1 %v3257_v40  ;;  %v3272_v51 = vld [vmem:[%s3686_s24 + $0x3d0] sm:$0xff]  ;;  %v3273_v40 = vld [vmem:[%s3686_s24 + $0x3d8] sm:$0xff] }
 0x311   : > { %v1610_v10 = vpop.f32.mrf.mxu3 }
 0x312   : > { %v1611_v11 = vadd.f32 %v1610_v10, %v1401_v25 }
 0x314   : > { %2800 = vst [vmem:[%s3944_s28 + $0x380] sm:$0xff] %v1611_v11 }
 0x315   : > { %1451 = vmatmul.f32.gmra.mxu2 %v3258_v44  ;;  %v1822_v29 = vpop.f32.mrf.mxu0  ;;  %v2031_v48 = vpop.f32.mrf.mxu1 }
 0x316   : > { %1660 = vmatmul.f32.gmra.mxu3 %v3259_v45  ;;  %v2032_v49 = vadd.f32 %v2031_v48, %v1822_v29 }
 0x318   : > { %v1404_v36 = vpop.f32.mrf.mxu2  ;;  %2804 = vst [vmem:[%s3944_s28 + $0x3a0] sm:$0xff] %v2032_v49  ;;  %1869 = vmatmul.f32.gmra.mxu0 %v3258_v44  ;;  %2078 = vmatmul.f32.gmra.mxu1 %v3259_v45  ;;  %v3274_v44 = vld [vmem:[%s3686_s24 + $0x3e0] sm:$0xff]  ;;  %v3275_v45 = vld [vmem:[%s3686_s24 + $0x3e8] sm:$0xff] }
 0x319   : > { %v1613_v0 = vpop.f32.mrf.mxu3 }
 0x31a   : > { %v1614_v7 = vadd.f32 %v1613_v0, %v1404_v36 }
 0x31c   : > { %2803 = vst [vmem:[%s3944_s28 + $0x398] sm:$0xff] %v1614_v7 }
 0x31d   : > { %1454 = vmatmul.f32.gmra.mxu2 %v3260_v37  ;;  %v1825_v14 = vpop.f32.mrf.mxu0  ;;  %v2034_v56 = vpop.f32.mrf.mxu1 }
 0x31e   : > { %1663 = vmatmul.f32.gmra.mxu3 %v3261_v54  ;;  %v2035_v42 = vadd.f32 %v2034_v56, %v1825_v14 }
 0x320   : > { %v1407_v43 = vpop.f32.mrf.mxu2  ;;  %2807 = vst [vmem:[%s3944_s28 + $0x3b8] sm:$0xff] %v2035_v42  ;;  %1872 = vmatmul.f32.gmra.mxu0 %v3260_v37  ;;  %2081 = vmatmul.f32.gmra.mxu1 %v3261_v54  ;;  %v3276_v37 = vld [vmem:[%s3686_s24 + $0x3f0] sm:$0xff]  ;;  %v3277_v54 = vld [vmem:[%s3686_s24 + $0x3f8] sm:$0xff]  ;;  %s3352_s24 = sshra.s32 %s2899_s29, 4  ;;  %s3353_s24 = int_to_ptr.hbm [resolvable:$true] %s3352_s24 }
 0x321   : > { %v1616_v57 = vpop.f32.mrf.mxu3  ;;  %s3354_s2 = scalar_lea.hbm %s3353_s24, 1536  ;;  %p3359_p2 = scmp.lt.s32.totalorder %s3353_s24, %s4647_s26 }
 0x322   : > { %v1617_v19 = vadd.f32 %v1616_v57, %v1407_v43  ;;  %p3355_p6 = scmp.ne.s32.totalorder %s3353_s24, %s3354_s2  ;;  %p3360_p8 = scmp.lt.s32.totalorder %s3358_s17, %s3354_s2 }
 0x324   : > { %2806 = vst [vmem:[%s3944_s28 + $0x3b0] sm:$0xff] %v1617_v19  ;;  %p3356_p7 = pnand %p3355_p6, %p3656_p1  ;;  %p3361_p9 = por %p3360_p8, %p3359_p2 }
 0x325   : > { %1457 = vmatmul.f32.gmra.mxu2 %v3262_v15  ;;  %v1828_v39 = vpop.f32.mrf.mxu0  ;;  %v2037_v1 = vpop.f32.mrf.mxu1 }
 0x326   : > { %1666 = vmatmul.f32.gmra.mxu3 %v3263_v55  ;;  %v2038_v16 = vadd.f32 %v2037_v1, %v1828_v39  ;;  %p3357_p11 = pneg %p3356_p7 }
 0x328   : > { %v1410_v32 = vpop.f32.mrf.mxu2  ;;  %2810 = vst [vmem:[%s3944_s28 + $0x3d0] sm:$0xff] %v2038_v16  ;;  %1875 = vmatmul.f32.gmra.mxu0 %v3262_v15  ;;  %2084 = vmatmul.f32.gmra.mxu1 %v3263_v55  ;;  %p3362_p10 = pnand %p3361_p9, %p3357_p11 }
 0x329   : > { %v1619_v4 = vpop.f32.mrf.mxu3 }
 0x32a   : > { %v1620_v13 = vadd.f32 %v1619_v4, %v1410_v32 }
 0x32c   : > { %2809 = vst [vmem:[%s3944_s28 + $0x3c8] sm:$0xff] %v1620_v13 }
 0x32d   : > { %1460 = vmatmul.f32.gmra.mxu2 %v3264_v5  ;;  %v1831_v52 = vpop.f32.mrf.mxu0  ;;  %v2040_v53 = vpop.f32.mrf.mxu1 }
 0x32e   : > { %1669 = vmatmul.f32.gmra.mxu3 %v3265_v46  ;;  %v2041_v22 = vadd.f32 %v2040_v53, %v1831_v52 }
 0x330   : > { %v1413_v23 = vpop.f32.mrf.mxu2  ;;  %2813 = vst [vmem:[%s3944_s28 + $0x3e8] sm:$0xff] %v2041_v22  ;;  %1878 = vmatmul.f32.gmra.mxu0 %v3264_v5  ;;  %2087 = vmatmul.f32.gmra.mxu1 %v3265_v46 }
 0x331   : > { %v1622_v61 = vpop.f32.mrf.mxu3 }
 0x332   : > { %v1623_v8 = vadd.f32 %v1622_v61, %v1413_v23 }
 0x334   : > { %2812 = vst [vmem:[%s3944_s28 + $0x3e0] sm:$0xff] %v1623_v8 }
 0x335   : > { %1463 = vmatmul.f32.gmra.mxu2 %v3266_v9  ;;  %v1834_v24 = vpop.f32.mrf.mxu0  ;;  %v2043_v30 = vpop.f32.mrf.mxu1 }
 0x336   : > { %1672 = vmatmul.f32.gmra.mxu3 %v3267_v62  ;;  %v2044_v63 = vadd.f32 %v2043_v30, %v1834_v24 }
 0x338   : > { %v1416_v6 = vpop.f32.mrf.mxu2  ;;  %2816 = vst [vmem:[%s3944_s28 + $0x400] sm:$0xff] %v2044_v63  ;;  %1881 = vmatmul.f32.gmra.mxu0 %v3266_v9  ;;  %2090 = vmatmul.f32.gmra.mxu1 %v3267_v62 }
 0x339   : > { %v1625_v26 = vpop.f32.mrf.mxu3 }
 0x33a   : > { %v1626_v20 = vadd.f32 %v1625_v26, %v1416_v6 }
 0x33c   : > { %2815 = vst [vmem:[%s3944_s28 + $0x3f8] sm:$0xff] %v1626_v20 }
 0x33d   : > { %1466 = vmatmul.f32.gmra.mxu2 %v3268_v21  ;;  %v1837_v18 = vpop.f32.mrf.mxu0  ;;  %v2046_v33 = vpop.f32.mrf.mxu1 }
 0x33e   : > { %1675 = vmatmul.f32.gmra.mxu3 %v3269_v27  ;;  %v2047_v47 = vadd.f32 %v2046_v33, %v1837_v18 }
 0x340   : > { %v1419_v28 = vpop.f32.mrf.mxu2  ;;  %2819 = vst [vmem:[%s3944_s28 + $0x418] sm:$0xff] %v2047_v47  ;;  %1884 = vmatmul.f32.gmra.mxu0 %v3268_v21  ;;  %2093 = vmatmul.f32.gmra.mxu1 %v3269_v27 }
 0x341   : > { %v1628_v31 = vpop.f32.mrf.mxu3 }
 0x342   : > { %v1629_v2 = vadd.f32 %v1628_v31, %v1419_v28 }
 0x344   : > { %2818 = vst [vmem:[%s3944_s28 + $0x410] sm:$0xff] %v1629_v2 }
 0x345   : > { %1469 = vmatmul.f32.gmra.mxu2 %v3270_v34  ;;  %v1840_v35 = vpop.f32.mrf.mxu0  ;;  %v2049_v3 = vpop.f32.mrf.mxu1 }
 0x346   : > { %1678 = vmatmul.f32.gmra.mxu3 %v3271_v60  ;;  %v2050_v58 = vadd.f32 %v2049_v3, %v1840_v35 }
 0x348   : > { %v1422_v59 = vpop.f32.mrf.mxu2  ;;  %2822 = vst [vmem:[%s3944_s28 + $0x430] sm:$0xff] %v2050_v58  ;;  %1887 = vmatmul.f32.gmra.mxu0 %v3270_v34  ;;  %2096 = vmatmul.f32.gmra.mxu1 %v3271_v60 }
 0x349   : > { %v1631_v38 = vpop.f32.mrf.mxu3 }
 0x34a   : > { %v1632_v50 = vadd.f32 %v1631_v38, %v1422_v59 }
 0x34c   : > { %2821 = vst [vmem:[%s3944_s28 + $0x428] sm:$0xff] %v1632_v50 }
 0x34d   : > { %1472 = vmatmul.f32.gmra.mxu2 %v3272_v51  ;;  %v1843_v12 = vpop.f32.mrf.mxu0  ;;  %v2052_v17 = vpop.f32.mrf.mxu1 }
 0x34e   : > { %1681 = vmatmul.f32.gmra.mxu3 %v3273_v40  ;;  %v2053_v41 = vadd.f32 %v2052_v17, %v1843_v12 }
 0x350   : > { %v1425_v25 = vpop.f32.mrf.mxu2  ;;  %2825 = vst [vmem:[%s3944_s28 + $0x448] sm:$0xff] %v2053_v41  ;;  %1890 = vmatmul.f32.gmra.mxu0 %v3272_v51  ;;  %2099 = vmatmul.f32.gmra.mxu1 %v3273_v40 }
 0x351   : > { %v1634_v10 = vpop.f32.mrf.mxu3 }
 0x352   : > { %v1635_v11 = vadd.f32 %v1634_v10, %v1425_v25 }
 0x354   : > { %2824 = vst [vmem:[%s3944_s28 + $0x440] sm:$0xff] %v1635_v11 }
 0x355   : > { %1475 = vmatmul.f32.gmra.mxu2 %v3274_v44  ;;  %v1846_v29 = vpop.f32.mrf.mxu0  ;;  %v2055_v48 = vpop.f32.mrf.mxu1 }
 0x356   : > { %1684 = vmatmul.f32.gmra.mxu3 %v3275_v45  ;;  %v2056_v49 = vadd.f32 %v2055_v48, %v1846_v29 }
 0x358   : > { %v1428_v36 = vpop.f32.mrf.mxu2  ;;  %2828 = vst [vmem:[%s3944_s28 + $0x460] sm:$0xff] %v2056_v49  ;;  %1893 = vmatmul.f32.gmra.mxu0 %v3274_v44  ;;  %2102 = vmatmul.f32.gmra.mxu1 %v3275_v45 }
 0x359   : > { %v1637_v0 = vpop.f32.mrf.mxu3 }
 0x35a   : > { %v1638_v7 = vadd.f32 %v1637_v0, %v1428_v36 }
 0x35c   : > { %2827 = vst [vmem:[%s3944_s28 + $0x458] sm:$0xff] %v1638_v7 }
 0x35d   : > { %1478 = vmatmul.f32.gmra.mxu2 %v3276_v37  ;;  %v1849_v14 = vpop.f32.mrf.mxu0  ;;  %v2058_v56 = vpop.f32.mrf.mxu1 }
 0x35e   : > { %1687 = vmatmul.f32.gmra.mxu3 %v3277_v54  ;;  %v2059_v42 = vadd.f32 %v2058_v56, %v1849_v14 }
 0x360   : > { %v1431_v43 = vpop.f32.mrf.mxu2  ;;  %2831 = vst [vmem:[%s3944_s28 + $0x478] sm:$0xff] %v2059_v42  ;;  %1896 = vmatmul.f32.gmra.mxu0 %v3276_v37  ;;  %2105 = vmatmul.f32.gmra.mxu1 %v3277_v54 }
 0x361   : > { %v1640_v57 = vpop.f32.mrf.mxu3 }
 0x362   : > { %v1641_v19 = vadd.f32 %v1640_v57, %v1431_v43 }
 0x364   : > { %2830 = vst [vmem:[%s3944_s28 + $0x470] sm:$0xff] %v1641_v19 }
 0x365   : > { %v1852_v15 = vpop.f32.mrf.mxu0  ;;  %v2061_v55 = vpop.f32.mrf.mxu1 }
 0x366   : > { %v2062_v39 = vadd.f32 %v2061_v55, %v1852_v15 }
 0x368   : > { %v1434_v1 = vpop.f32.mrf.mxu2  ;;  %2834 = vst [vmem:[%s3944_s28 + $0x490] sm:$0xff] %v2062_v39 }
 0x369   : > { %v1643_v16 = vpop.f32.mrf.mxu3 }
 0x36a   : > { %v1644_v32 = vadd.f32 %v1643_v16, %v1434_v1 }
 0x36c   : > { %2833 = vst [vmem:[%s3944_s28 + $0x488] sm:$0xff] %v1644_v32 }
 0x36d   : > { %v1855_v4 = vpop.f32.mrf.mxu0  ;;  %v2064_v13 = vpop.f32.mrf.mxu1 }
 0x36e   : > { %v2065_v5 = vadd.f32 %v2064_v13, %v1855_v4 }
 0x370   : > { %v1437_v46 = vpop.f32.mrf.mxu2  ;;  %2837 = vst [vmem:[%s3944_s28 + $0x4a8] sm:$0xff] %v2065_v5 }
 0x371   : > { %v1646_v52 = vpop.f32.mrf.mxu3 }
 0x372   : > { %v1647_v53 = vadd.f32 %v1646_v52, %v1437_v46 }
 0x374   : > { %2836 = vst [vmem:[%s3944_s28 + $0x4a0] sm:$0xff] %v1647_v53 }
 0x375   : > { %v1858_v22 = vpop.f32.mrf.mxu0  ;;  %v2067_v23 = vpop.f32.mrf.mxu1 }
 0x376   : > { %v2068_v61 = vadd.f32 %v2067_v23, %v1858_v22 }
 0x378   : > { %v1440_v8 = vpop.f32.mrf.mxu2  ;;  %2840 = vst [vmem:[%s3944_s28 + $0x4c0] sm:$0xff] %v2068_v61 }
 0x379   : > { %v1649_v9 = vpop.f32.mrf.mxu3 }
 0x37a   : > { %v1650_v62 = vadd.f32 %v1649_v9, %v1440_v8 }
 0x37c   : > { %2839 = vst [vmem:[%s3944_s28 + $0x4b8] sm:$0xff] %v1650_v62 }
 0x37d   : > { %v1861_v24 = vpop.f32.mrf.mxu0  ;;  %v2070_v30 = vpop.f32.mrf.mxu1 }
 0x37e   : > { %v2071_v63 = vadd.f32 %v2070_v30, %v1861_v24 }
 0x380   : > { %v1443_v6 = vpop.f32.mrf.mxu2  ;;  %2843 = vst [vmem:[%s3944_s28 + $0x4d8] sm:$0xff] %v2071_v63 }
 0x381   : > { %v1652_v26 = vpop.f32.mrf.mxu3 }
 0x382   : > { %v1653_v20 = vadd.f32 %v1652_v26, %v1443_v6 }
 0x384   : > { %2842 = vst [vmem:[%s3944_s28 + $0x4d0] sm:$0xff] %v1653_v20 }
 0x385   : > { %v1864_v21 = vpop.f32.mrf.mxu0  ;;  %v2073_v27 = vpop.f32.mrf.mxu1 }
 0x386   : > { %v2074_v18 = vadd.f32 %v2073_v27, %v1864_v21 }
 0x388   : > { %v1446_v33 = vpop.f32.mrf.mxu2  ;;  %2846 = vst [vmem:[%s3944_s28 + $0x4f0] sm:$0xff] %v2074_v18 }
 0x389   : > { %v1655_v47 = vpop.f32.mrf.mxu3 }
 0x38a   : > { %v1656_v28 = vadd.f32 %v1655_v47, %v1446_v33 }
 0x38c   : > { %2845 = vst [vmem:[%s3944_s28 + $0x4e8] sm:$0xff] %v1656_v28 }
 0x38d   : > { %v1867_v31 = vpop.f32.mrf.mxu0  ;;  %v2076_v2 = vpop.f32.mrf.mxu1 }
 0x38e   : > { %v2077_v34 = vadd.f32 %v2076_v2, %v1867_v31 }
 0x390   : > { %v1449_v60 = vpop.f32.mrf.mxu2  ;;  %2849 = vst [vmem:[%s3944_s28 + $0x508] sm:$0xff] %v2077_v34 }
 0x391   : > { %v1658_v35 = vpop.f32.mrf.mxu3 }
 0x392   : > { %v1659_v3 = vadd.f32 %v1658_v35, %v1449_v60 }
 0x394   : > { %2848 = vst [vmem:[%s3944_s28 + $0x500] sm:$0xff] %v1659_v3 }
 0x395   : > { %v1870_v58 = vpop.f32.mrf.mxu0  ;;  %v2079_v59 = vpop.f32.mrf.mxu1 }
 0x396   : > { %v2080_v38 = vadd.f32 %v2079_v59, %v1870_v58 }
 0x398   : > { %v1452_v50 = vpop.f32.mrf.mxu2  ;;  %2852 = vst [vmem:[%s3944_s28 + $0x520] sm:$0xff] %v2080_v38 }
 0x399   : > { %v1661_v51 = vpop.f32.mrf.mxu3 }
 0x39a   : > { %v1662_v40 = vadd.f32 %v1661_v51, %v1452_v50 }
 0x39c   : > { %2851 = vst [vmem:[%s3944_s28 + $0x518] sm:$0xff] %v1662_v40 }
 0x39d   : > { %v1873_v12 = vpop.f32.mrf.mxu0  ;;  %v2082_v17 = vpop.f32.mrf.mxu1 }
 0x39e   : > { %v2083_v41 = vadd.f32 %v2082_v17, %v1873_v12 }
 0x3a0   : > { %v1455_v25 = vpop.f32.mrf.mxu2  ;;  %2855 = vst [vmem:[%s3944_s28 + $0x538] sm:$0xff] %v2083_v41 }
 0x3a1   : > { %v1664_v10 = vpop.f32.mrf.mxu3 }
 0x3a2   : > { %v1665_v11 = vadd.f32 %v1664_v10, %v1455_v25 }
 0x3a4   : > { %2854 = vst [vmem:[%s3944_s28 + $0x530] sm:$0xff] %v1665_v11 }
 0x3a5   : > { %v1876_v44 = vpop.f32.mrf.mxu0  ;;  %v2085_v45 = vpop.f32.mrf.mxu1 }
 0x3a6   : > { %v2086_v29 = vadd.f32 %v2085_v45, %v1876_v44 }
 0x3a8   : > { %v1458_v48 = vpop.f32.mrf.mxu2  ;;  %2858 = vst [vmem:[%s3944_s28 + $0x550] sm:$0xff] %v2086_v29 }
 0x3a9   : > { %v1667_v49 = vpop.f32.mrf.mxu3 }
 0x3aa   : > { %v1668_v36 = vadd.f32 %v1667_v49, %v1458_v48 }
 0x3ac   : > { %2857 = vst [vmem:[%s3944_s28 + $0x548] sm:$0xff] %v1668_v36 }
 0x3ad   : > { %v1879_v0 = vpop.f32.mrf.mxu0  ;;  %v2088_v7 = vpop.f32.mrf.mxu1 }
 0x3ae   : > { %v2089_v37 = vadd.f32 %v2088_v7, %v1879_v0 }
 0x3b0   : > { %v1461_v54 = vpop.f32.mrf.mxu2  ;;  %2861 = vst [vmem:[%s3944_s28 + $0x568] sm:$0xff] %v2089_v37 }
 0x3b1   : > { %v1670_v14 = vpop.f32.mrf.mxu3 }
 0x3b2   : > { %v1671_v56 = vadd.f32 %v1670_v14, %v1461_v54 }
 0x3b4   : > { %2860 = vst [vmem:[%s3944_s28 + $0x560] sm:$0xff] %v1671_v56 }
 0x3b5   : > { %v1882_v42 = vpop.f32.mrf.mxu0  ;;  %v2091_v43 = vpop.f32.mrf.mxu1 }
 0x3b6   : > { %v2092_v57 = vadd.f32 %v2091_v43, %v1882_v42 }
 0x3b8   : > { %v1464_v19 = vpop.f32.mrf.mxu2  ;;  %2864 = vst [vmem:[%s3944_s28 + $0x580] sm:$0xff] %v2092_v57 }
 0x3b9   : > { %v1673_v15 = vpop.f32.mrf.mxu3 }
 0x3ba   : > { %v1674_v55 = vadd.f32 %v1673_v15, %v1464_v19 }
 0x3bc   : > { %2863 = vst [vmem:[%s3944_s28 + $0x578] sm:$0xff] %v1674_v55 }
 0x3bd   : > { %v1885_v39 = vpop.f32.mrf.mxu0  ;;  %v2094_v1 = vpop.f32.mrf.mxu1 }
 0x3be   : > { %v2095_v16 = vadd.f32 %v2094_v1, %v1885_v39 }
 0x3c0   : > { %v1467_v32 = vpop.f32.mrf.mxu2  ;;  %2867 = vst [vmem:[%s3944_s28 + $0x598] sm:$0xff] %v2095_v16 }
 0x3c1   : > { %v1676_v4 = vpop.f32.mrf.mxu3 }
 0x3c2   : > { %v1677_v13 = vadd.f32 %v1676_v4, %v1467_v32 }
 0x3c4   : > { %2866 = vst [vmem:[%s3944_s28 + $0x590] sm:$0xff] %v1677_v13 }
 0x3c5   : > { %v1888_v5 = vpop.f32.mrf.mxu0  ;;  %v2097_v46 = vpop.f32.mrf.mxu1 }
 0x3c6   : > { %v2098_v52 = vadd.f32 %v2097_v46, %v1888_v5 }
 0x3c8   : > { %v1470_v53 = vpop.f32.mrf.mxu2  ;;  %2870 = vst [vmem:[%s3944_s28 + $0x5b0] sm:$0xff] %v2098_v52 }
 0x3c9   : > { %v1679_v22 = vpop.f32.mrf.mxu3 }
 0x3ca   : > { %v1680_v23 = vadd.f32 %v1679_v22, %v1470_v53 }
 0x3cc   : > { %2869 = vst [vmem:[%s3944_s28 + $0x5a8] sm:$0xff] %v1680_v23 }
 0x3cd   : > { %v1891_v61 = vpop.f32.mrf.mxu0  ;;  %v2100_v8 = vpop.f32.mrf.mxu1 }
 0x3ce   : > { %v2101_v9 = vadd.f32 %v2100_v8, %v1891_v61 }
 0x3d0   : > { %v1473_v62 = vpop.f32.mrf.mxu2  ;;  %2873 = vst [vmem:[%s3944_s28 + $0x5c8] sm:$0xff] %v2101_v9 }
 0x3d1   : > { %v1682_v24 = vpop.f32.mrf.mxu3 }
 0x3d2   : > { %v1683_v30 = vadd.f32 %v1682_v24, %v1473_v62 }
 0x3d4   : > { %2872 = vst [vmem:[%s3944_s28 + $0x5c0] sm:$0xff] %v1683_v30 }
 0x3d5   : > { %v1894_v63 = vpop.f32.mrf.mxu0  ;;  %v2103_v6 = vpop.f32.mrf.mxu1 }
 0x3d6   : > { %v2104_v26 = vadd.f32 %v2103_v6, %v1894_v63 }
 0x3d8   : > { %v1476_v20 = vpop.f32.mrf.mxu2  ;;  %2876 = vst [vmem:[%s3944_s28 + $0x5e0] sm:$0xff] %v2104_v26 }
 0x3d9   : > { %v1685_v21 = vpop.f32.mrf.mxu3 }
 0x3da   : > { %v1686_v27 = vadd.f32 %v1685_v21, %v1476_v20 }
 0x3dc   : > { %2875 = vst [vmem:[%s3944_s28 + $0x5d8] sm:$0xff] %v1686_v27 }
 0x3dd   : > { %v1897_v18 = vpop.f32.mrf.mxu0  ;;  %v2106_v33 = vpop.f32.mrf.mxu1 }
 0x3de   : > { %v2107_v47 = vadd.f32 %v2106_v33, %v1897_v18 }
 0x3e0   : > { %v1479_v28 = vpop.f32.mrf.mxu2  ;;  %2879 = vst [vmem:[%s3944_s28 + $0x5f8] sm:$0xff] %v2107_v47 }
 0x3e1   : > { %v1688_v31 = vpop.f32.mrf.mxu3 }
 0x3e2   : > { %v1689_v2 = vadd.f32 %v1688_v31, %v1479_v28 }
 0x3e4   : > { %2878 = vst [vmem:[%s3944_s28 + $0x5f0] sm:$0xff] %v1689_v2 }
 0x3e5   : > { %3365 = shalt.err (!%p3362_p10)
}
 0x3e6   : > { %s3495_s20 = smov 384   ;;  %s3496_s28 = smov 768  }
 0x3e7   : > { %s3497_s12 = smov 24  }
 0x3e8   : > { %3077 = dma.vmem_to_hbm [thread:$0]  (%p3656_p1), %s2897_s5, 24576, %s2899_s29, %s2881_s15, %s3495_s20, %s3496_s28, %s3497_s12  }
 0x3e9 PF: > { %p3091_p12 = scmp.ge.s32.totalorder %s3488_s22, 2  ;;  %s2913_s23 = sand.u32 1, %s3436_s9  }
 0x3ea   : > { %s2914_s27 = scalar_lea.sflag [#allocation5], %s2913_s23 }
 0x3eb   : > { %p3087_p3 = pnand %p3091_p12, %p3671_p5 }
 0x3ed   : > { %p3088_p13 = pneg %p3087_p3 }
 0x3ef   : > { %3431 = dma.done.wait (%p3088_p13), %s2914_s27, 24576  }
 0x3f0   : > { %3433 = vsyncadd (%p3088_p13), %s2914_s27, 4294942720  ;;  %s21_s22 = sadd.s32 1, %s3488_s22   ;;  %s4649_s4 = sld [smem:[#allocation18_spill]] }
 0x3f1   : > { %p4527_p0 = scmp.ge.s32.totalorder %s21_s22, 6   ;;  %s4650_s18 = sld [smem:[#allocation12_spill]] }
 0x3f2   : > { %s4651_s17 = sld [smem:[#allocation19_spill]]  ;;  %s4656_s9 = smov %s3440_s10 }
 0x3f3   : > { %s4652_s8 = sld [smem:[#allocation14_spill]]  ;;  %s4657_s10 = smov %s3444_s11 }
 0x3f4   : > { %s4653_s19 = sld [smem:[#allocation15_spill]]  ;;  %s4658_s11 = smov %s3668_s6 }
 0x3f5   : > { %s4654_s20 = sld [smem:[#allocation16_spill]]  ;;  %s4659_s12 = smov %s3452_s13 }
 0x3f6   : > { %s4655_s21 = sld [smem:[#allocation17_spill]]  ;;  %s4660_s13 = smov %s3456_s14 }
 0x3f7   : > { %s4661_s14 = smov %s4649_s4  ;;  %s4662_s15 = smov %s3464_s16 }
 0x3f8   : > { %s4663_s16 = smov %s4650_s18  ;;  %20 = sbr.rel (!%p4527_p0) target bundleno = 15 (0xf), region = 94 }
 0x3f9   : > { %s4664_s18 = smov %s4652_s8 }
 0x3fd   :  { %2920 = vsyncpa [#allocation4], 1 }
 0x3fe   :  { %2922 = vsyncpa [#allocation4 + $0x1], 1 }
 0x3ff   :  { %2923 = vsyncpa [#allocation7], 1 }
 0x400   :  { %2925 = vsyncpa [#allocation7 + $0x1], 1 }
 0x401   :  { %2926 = vsyncpa [#allocation5], 1 }
 0x402   :  { %2928 = vsyncpa [#allocation5 + $0x1], 1 }

</bundles_post_ra>
